<compile_context>
chip_gen: v7x
topology: tpu7x:2x2x1
jax: 0.10.0
libtpu: 0.0.40
codegen_flags: <defaults>
</compile_context>

<pallas_src>
import functools

import numpy as np
import jax
import jax.numpy as jnp
from jax import lax
from jax.experimental import pallas as pl
from jax.experimental.pallas import tpu as pltpu


def _dfsmn_kernel(v_ref, lf_ref, rf_ref, p_ref, *,
                  l_order, r_order, l_stride, r_stride):
    """Processes one (T, M_blk, Dp) block.

    Step 1 (fused pre-pass, fully parallel over frames, one store per region):
        p[f] = (1 + lf[0]) * v[f] + sum_j rf[j-1] * v[f + j*r_stride]
    Step 2 (sequential left recurrence, the only serial part):
        p[f] += sum_{k=1..l_order-1} lf[k] * p[f - k*l_stride]
    All accumulation in f32; stores cast to the storage dtype.
    """
    T = p_ref.shape[0]
    cdt = jnp.float32
    lf = lf_ref[...].astype(cdt)          # (max(l_order,1), Dp)
    rf = rf_ref[...].astype(cdt)          # (max(r_order,1), Dp)
    base = (1.0 + lf[0:1, :]) if l_order >= 1 else None   # (1, Dp)

    # ---- Step 1: fused right-context pre-pass ------------------------------
    # Partition [0, T) into regions with a static count `m` of valid right
    # taps:  frame f has tap j valid  iff  f <= T-1 - j*r_stride.
    def bnd(m):
        return max(0, T - m * r_stride)

    regions = []
    if bnd(r_order) > 0:                          # all r_order taps valid
        regions.append((0, bnd(r_order), r_order))
    for m in range(r_order - 1, -1, -1):          # tail: exactly m taps valid
        lo, hi = bnd(m + 1), bnd(m)
        if hi > lo:
            regions.append((lo, hi, m))

    for lo, hi, m in regions:
        L = hi - lo
        v0 = v_ref[pl.ds(lo, L)].astype(cdt)      # (L, M_blk, Dp)
        acc = v0 * base if base is not None else v0
        for j in range(1, m + 1):                 # static, mask-free
            acc = acc + rf[j - 1:j, :] * v_ref[pl.ds(lo + j * r_stride, L)].astype(cdt)
        p_ref[pl.ds(lo, L)] = acc.astype(p_ref.dtype)   # single store / region

    # ---- Step 2: sequential left recurrence over frames --------------------
    if l_order >= 2:
        n_rec = l_order - 1
        # Keep taps as (1, Dp): Mosaic sublane-broadcasts at the multiply.
        lf_taps = [lf[k:k + 1, :] for k in range(1, l_order)]

        def frame_update(f, kmax):
            acc = p_ref[f].astype(cdt)            # (M_blk, Dp)
            for k in range(1, kmax + 1):
                acc = acc + lf_taps[k - 1] * p_ref[f - k * l_stride].astype(cdt)
            p_ref[f] = acc.astype(p_ref.dtype)

        def run(lo, hi, kmax):
            """Frames [lo, hi) all have exactly `kmax` valid recurrent taps."""
            if hi <= lo or kmax == 0:
                return
            if hi - lo <= 16:                     # short: full unroll
                for f in range(lo, hi):
                    frame_update(f, kmax)
            else:                                 # long: fori_loop, unroll=8
                def body(f, carry):
                    frame_update(f, kmax)
                    return carry
                lax.fori_loop(lo, hi, body, 0, unroll=8)

        steady_start = min(n_rec * l_stride, T)
        # Prologue: boundary frames, static tap count per run, mask-free.
        for c in range(1, n_rec):
            run(c * l_stride, min((c + 1) * l_stride, steady_start), c)
        # Steady state: every left tap valid.
        run(steady_start, T, n_rec)


def _choose_group(N, D):
    """Fold G batch rows into the lane axis so the last dim is lane-dense."""
    if D % 128 == 0:
        return 1
    # Prefer the smallest divisor G of N with G*D a multiple of 128 (<= 512):
    # fully lane-dense output while keeping M large for grid parallelism.
    for g in range(1, N + 1):
        if N % g == 0 and (g * D) % 128 == 0 and g * D <= 512:
            return g
    # TODO(synk): pad D up to a multiple of 128 instead of accepting a
    # lane-sparse Dp when N has no suitable divisor.
    g_max = max(1, 128 // D)
    for g in range(g_max, 0, -1):
        if N % g == 0:
            return g
    return 1


def _choose_m_tile(M, row_bytes, budget_bytes, sublane, min_blocks):
    """Largest divisor-tile of M (sublane-aligned or == M) fitting the budget,
    preferring tiles that keep >= min_blocks grid steps for pipelining /
    megacore sharding."""
    cands = [d for d in range(sublane, M, sublane) if M % d == 0] + [M]
    fitting = [d for d in cands if d * row_bytes <= budget_bytes]
    if not fitting:
        return min(cands)                    # caller enforces the hard VMEM cap
    preferred = [d for d in fitting if M // d >= min_blocks]
    return max(preferred) if preferred else max(fitting)


def _vmem_capacity_bytes():
    """Trace-time VMEM capacity query; conservative (v7x) fallback."""
    try:
        info = pltpu.get_tpu_info()
        for name in ("vmem_capacity_bytes", "vmem_size_bytes", "vmem_bytes"):
            cap = getattr(info, name, None)
            if cap:
                return int(cap)
    except Exception:
        pass
    return 64 * 1024 * 1024


@functools.partial(jax.jit, static_argnames=("l_stride", "r_stride"))
def dfsmn_forward(v, l_filter, r_filter, *, l_stride, r_stride):
    """v: (B, C, T, D), l_filter: (l_order, D), r_filter: (r_order, D)."""
    assert l_stride >= 1 and r_stride >= 1, "DFsmn requires strides >= 1"
    B, C, T, D = v.shape
    l_order = int(l_filter.shape[0])
    r_order = int(r_filter.shape[0])
    N = B * C

    # ---- lane-densify: (B,C,T,D) -> (T, M, Dp) with Dp = G*D ---------------
    # TODO(synk): emit this layout directly from the upstream producer (or fuse
    # the transposes into adjacent ops); the transpose pair adds ~4 extra HBM
    # passes on top of the kernel's ~2.
    G = _choose_group(N, D)
    M = N // G
    Dp = G * D
    v_k = jnp.transpose(v.reshape(N, T, D), (1, 0, 2)).reshape(T, M, Dp)

    def _prep_filter(filt, order):
        if order == 0:                       # avoid a zero-sized BlockSpec dim
            return jnp.zeros((1, Dp), jnp.float32)
        return jnp.tile(filt.astype(jnp.float32), (1, G))   # keep filters f32

    lf_k = _prep_filter(l_filter, l_order)
    rf_k = _prep_filter(r_filter, r_order)

    # ---- VMEM-capacity-aware tiling over the independent folded-row axis ---
    itemsize = jnp.dtype(v.dtype).itemsize
    sublane = {4: 8, 2: 16, 1: 32}.get(itemsize, 8)      # dtype-aware alignment
    # Per folded row of one block: double-buffered in + out windows (4 copies
    # in storage dtype) + ~2 block-sized f32 temporaries for the fused pre-pass.
    row_vmem = T * Dp * (4 * itemsize + 2 * 4)
    vmem_cap = _vmem_capacity_bytes()
    budget = int(vmem_cap * 0.55)
    m_tile = _choose_m_tile(M, row_vmem, budget, sublane, min_blocks=4)

    need = m_tile * row_vmem + 8 * (lf_k.size + rf_k.size) + (2 << 20)
    if need > int(vmem_cap * 0.9):
        # TODO(synk): add a T-tiled path (grid over frames marked "arbitrary",
        # carry the last l_order*l_stride frames of p in persistent VMEM
        # scratch, read an r_order*r_stride halo of v) for very long sequences.
        raise ValueError(
            f"DFsmn block needs ~{need} B of VMEM but only {vmem_cap} B are "
            "available; sequence too long for the full-T kernel.")
    vmem_limit = min(int(vmem_cap * 0.9), max(need, 48 * 1024 * 1024))

    grid = (M // m_tile,)
    kernel = functools.partial(
        _dfsmn_kernel, l_order=l_order, r_order=r_order,
        l_stride=l_stride, r_stride=r_stride)

    p_k = pl.pallas_call(
        kernel,
        out_shape=jax.ShapeDtypeStruct((T, M, Dp), v.dtype),
        grid_spec=pltpu.PrefetchScalarGridSpec(
            num_scalar_prefetch=0,
            grid=grid,
            in_specs=[
                pl.BlockSpec((T, m_tile, Dp), lambda i: (0, i, 0)),
                pl.BlockSpec((lf_k.shape[0], Dp), lambda i: (0, 0)),
                pl.BlockSpec((rf_k.shape[0], Dp), lambda i: (0, 0)),
            ],
            out_specs=pl.BlockSpec((T, m_tile, Dp), lambda i: (0, i, 0)),
        ),
        # Safe: in/out index maps are identical and M-blocks are disjoint.
        # Re-verify if a T-tiled out spec is ever added.
        input_output_aliases={0: 0},
        compiler_params=pltpu.CompilerParams(
            dimension_semantics=("parallel",),
            vmem_limit_bytes=int(vmem_limit),
        ),
    )(v_k, lf_k, rf_k)

    # ---- unfold back to (B, C, T, D) ---------------------------------------
    return jnp.transpose(p_k.reshape(T, N, D), (1, 0, 2)).reshape(B, C, T, D)


def dfsmn_ref(v, l_filter, r_filter, l_stride, r_stride):
    """Pure-JAX mirror of the PyTorch loop (ground truth for checking)."""
    B, C, T, D = v.shape
    p = v
    for frame in range(T):
        left = jnp.zeros((B, C, D), v.dtype)
        for k in range(l_filter.shape[0]):
            idx = frame - k * l_stride
            if idx < 0:
                break
            left = left + l_filter[k] * p[:, :, idx]
        p = p.at[:, :, frame].add(left)
        right = jnp.zeros((B, C, D), v.dtype)
        for j in range(1, r_filter.shape[0] + 1):
            idx = frame + j * r_stride
            if idx >= T:
                break
            right = right + r_filter[j - 1] * p[:, :, idx]
        p = p.at[:, :, frame].add(right)
    return p


if __name__ == "__main__":
    base_key = jax.random.PRNGKey(0)

    def _run_case(case_id, B, C, T, D, l_order, r_order, l_stride, r_stride, scale):
        key = jax.random.fold_in(base_key, case_id)
        k_v, k_l, k_r = jax.random.split(key, 3)
        v = jax.random.normal(k_v, (B, C, T, D), jnp.float32)
        # Deterministic synthetic parameters (module init uses randn(order, d_v));
        # scaled to keep the recurrence numerically tame.
        l_filter = scale * jax.random.normal(k_l, (l_order, D), jnp.float32)
        r_filter = scale * jax.random.normal(k_r, (r_order, D), jnp.float32)

        out = dfsmn_forward(v, l_filter, r_filter,
                            l_stride=l_stride, r_stride=r_stride)
        out = jax.block_until_ready(out)
        ref = dfsmn_ref(v, l_filter, r_filter, l_stride, r_stride)
        np.testing.assert_allclose(np.asarray(out), np.asarray(ref),
                                   rtol=1e-3, atol=1e-3)

    # Case 1: canonical small shape (Dp folded to 128, fully-unrolled steady state).
    _run_case(0, B=2, C=4, T=16, D=32,
              l_order=4, r_order=3, l_stride=1, r_stride=2, scale=0.2)
    # Case 2: longer T with strides > 1 — exercises the strided prologue runs,
    # the fori_loop steady state, and the lane-fold fallback (Dp = 96).
    _run_case(1, B=2, C=3, T=40, D=32,
              l_order=3, r_order=2, l_stride=2, r_stride=3, scale=0.1)

    print("KERNEL_OK")
</pallas_src>

<mosaic_0001>
module attributes {stable_mosaic.version = 11 : i64} {
  func.func @_dfsmn_kernel(%arg0: i32, %arg1: memref<16x2x128xf32, #tpu.memory_space<vmem>>, %arg2: memref<4x128xf32, #tpu.memory_space<vmem>>, %arg3: memref<3x128xf32, #tpu.memory_space<vmem>>, %arg4: memref<16x2x128xf32, #tpu.memory_space<vmem>>) attributes {dimension_semantics = [#tpu.dimension_semantics<parallel>], iteration_bounds = array<i64: 1>, scalar_prefetch = 0 : i64, scratch_operands = 0 : i64, tpu.core_type = #tpu.core_type<tc>, window_params = [{transform_indices = @transform_0, window_bounds = array<i64: 16, 2, 128>}, {pipeline_mode = #tpu.pipeline_mode<synchronous>, transform_indices = @transform_1, window_bounds = array<i64: 4, 128>}, {pipeline_mode = #tpu.pipeline_mode<synchronous>, transform_indices = @transform_2, window_bounds = array<i64: 3, 128>}, {transform_indices = @transform_3, window_bounds = array<i64: 16, 2, 128>}]} {
    %c0 = arith.constant 0 : index
    %c0_0 = arith.constant 0 : index
    %0 = vector.load %arg2[%c0, %c0_0] : memref<4x128xf32, #tpu.memory_space<vmem>>, vector<4x128xf32>
    %c0_1 = arith.constant 0 : index
    %c0_2 = arith.constant 0 : index
    %1 = vector.load %arg3[%c0_1, %c0_2] : memref<3x128xf32, #tpu.memory_space<vmem>>, vector<3x128xf32>
    %2 = vector.extract_strided_slice %0 {offsets = [0, 0], sizes = [1, 128], strides = [1, 1]} : vector<4x128xf32> to vector<1x128xf32>
    %cst = arith.constant 1.000000e+00 : f32
    %3 = vector.broadcast %cst : f32 to vector<1x128xf32>
    %4 = arith.addf %3, %2 : vector<1x128xf32>
    %c0_3 = arith.constant 0 : index
    %c0_4 = arith.constant 0 : index
    %c0_5 = arith.constant 0 : index
    %5 = vector.load %arg1[%c0_3, %c0_4, %c0_5] : memref<16x2x128xf32, #tpu.memory_space<vmem>>, vector<10x2x128xf32>
    %6 = vector.shape_cast %4 : vector<1x128xf32> to vector<1x1x128xf32>
    %7 = vector.broadcast %6 : vector<1x1x128xf32> to vector<10x2x128xf32>
    %8 = arith.mulf %5, %7 : vector<10x2x128xf32>
    %9 = vector.extract_strided_slice %1 {offsets = [0, 0], sizes = [1, 128], strides = [1, 1]} : vector<3x128xf32> to vector<1x128xf32>
    %c2 = arith.constant 2 : index
    %c0_6 = arith.constant 0 : index
    %c0_7 = arith.constant 0 : index
    %10 = vector.load %arg1[%c2, %c0_6, %c0_7] : memref<16x2x128xf32, #tpu.memory_space<vmem>>, vector<10x2x128xf32>
    %11 = vector.shape_cast %9 : vector<1x128xf32> to vector<1x1x128xf32>
    %12 = vector.broadcast %11 : vector<1x1x128xf32> to vector<10x2x128xf32>
    %13 = arith.mulf %12, %10 : vector<10x2x128xf32>
    %14 = arith.addf %8, %13 : vector<10x2x128xf32>
    %15 = vector.extract_strided_slice %1 {offsets = [1, 0], sizes = [1, 128], strides = [1, 1]} : vector<3x128xf32> to vector<1x128xf32>
    %c4 = arith.constant 4 : index
    %c0_8 = arith.constant 0 : index
    %c0_9 = arith.constant 0 : index
    %16 = vector.load %arg1[%c4, %c0_8, %c0_9] : memref<16x2x128xf32, #tpu.memory_space<vmem>>, vector<10x2x128xf32>
    %17 = vector.shape_cast %15 : vector<1x128xf32> to vector<1x1x128xf32>
    %18 = vector.broadcast %17 : vector<1x1x128xf32> to vector<10x2x128xf32>
    %19 = arith.mulf %18, %16 : vector<10x2x128xf32>
    %20 = arith.addf %14, %19 : vector<10x2x128xf32>
    %21 = vector.extract_strided_slice %1 {offsets = [2, 0], sizes = [1, 128], strides = [1, 1]} : vector<3x128xf32> to vector<1x128xf32>
    %c6 = arith.constant 6 : index
    %c0_10 = arith.constant 0 : index
    %c0_11 = arith.constant 0 : index
    %22 = vector.load %arg1[%c6, %c0_10, %c0_11] : memref<16x2x128xf32, #tpu.memory_space<vmem>>, vector<10x2x128xf32>
    %23 = vector.shape_cast %21 : vector<1x128xf32> to vector<1x1x128xf32>
    %24 = vector.broadcast %23 : vector<1x1x128xf32> to vector<10x2x128xf32>
    %25 = arith.mulf %24, %22 : vector<10x2x128xf32>
    %26 = arith.addf %20, %25 : vector<10x2x128xf32>
    %c0_12 = arith.constant 0 : index
    %c0_13 = arith.constant 0 : index
    %c0_14 = arith.constant 0 : index
    %27 = vector.load %arg4[%c0_12, %c0_13, %c0_14] : memref<16x2x128xf32, #tpu.memory_space<vmem>>, vector<10x2x128xf32>
    tpu.vector_store %arg4[%c0_12, %c0_13, %c0_14], %26 {strides = array<i32>} : memref<16x2x128xf32, #tpu.memory_space<vmem>>, vector<10x2x128xf32>,
    %c10 = arith.constant 10 : index
    %c0_15 = arith.constant 0 : index
    %c0_16 = arith.constant 0 : index
    %28 = vector.load %arg1[%c10, %c0_15, %c0_16] : memref<16x2x128xf32, #tpu.memory_space<vmem>>, vector<2x2x128xf32>
    %29 = vector.shape_cast %4 : vector<1x128xf32> to vector<1x1x128xf32>
    %30 = vector.broadcast %29 : vector<1x1x128xf32> to vector<2x2x128xf32>
    %31 = arith.mulf %28, %30 : vector<2x2x128xf32>
    %32 = vector.extract_strided_slice %1 {offsets = [0, 0], sizes = [1, 128], strides = [1, 1]} : vector<3x128xf32> to vector<1x128xf32>
    %c12 = arith.constant 12 : index
    %c0_17 = arith.constant 0 : index
    %c0_18 = arith.constant 0 : index
    %33 = vector.load %arg1[%c12, %c0_17, %c0_18] : memref<16x2x128xf32, #tpu.memory_space<vmem>>, vector<2x2x128xf32>
    %34 = vector.shape_cast %32 : vector<1x128xf32> to vector<1x1x128xf32>
    %35 = vector.broadcast %34 : vector<1x1x128xf32> to vector<2x2x128xf32>
    %36 = arith.mulf %35, %33 : vector<2x2x128xf32>
    %37 = arith.addf %31, %36 : vector<2x2x128xf32>
    %38 = vector.extract_strided_slice %1 {offsets = [1, 0], sizes = [1, 128], strides = [1, 1]} : vector<3x128xf32> to vector<1x128xf32>
    %c14 = arith.constant 14 : index
    %c0_19 = arith.constant 0 : index
    %c0_20 = arith.constant 0 : index
    %39 = vector.load %arg1[%c14, %c0_19, %c0_20] : memref<16x2x128xf32, #tpu.memory_space<vmem>>, vector<2x2x128xf32>
    %40 = vector.shape_cast %38 : vector<1x128xf32> to vector<1x1x128xf32>
    %41 = vector.broadcast %40 : vector<1x1x128xf32> to vector<2x2x128xf32>
    %42 = arith.mulf %41, %39 : vector<2x2x128xf32>
    %43 = arith.addf %37, %42 : vector<2x2x128xf32>
    %c10_21 = arith.constant 10 : index
    %c0_22 = arith.constant 0 : index
    %c0_23 = arith.constant 0 : index
    %44 = vector.load %arg4[%c10_21, %c0_22, %c0_23] : memref<16x2x128xf32, #tpu.memory_space<vmem>>, vector<2x2x128xf32>
    tpu.vector_store %arg4[%c10_21, %c0_22, %c0_23], %43 {strides = array<i32>} : memref<16x2x128xf32, #tpu.memory_space<vmem>>, vector<2x2x128xf32>,
    %c12_24 = arith.constant 12 : index
    %c0_25 = arith.constant 0 : index
    %c0_26 = arith.constant 0 : index
    %45 = vector.load %arg1[%c12_24, %c0_25, %c0_26] : memref<16x2x128xf32, #tpu.memory_space<vmem>>, vector<2x2x128xf32>
    %46 = vector.shape_cast %4 : vector<1x128xf32> to vector<1x1x128xf32>
    %47 = vector.broadcast %46 : vector<1x1x128xf32> to vector<2x2x128xf32>
    %48 = arith.mulf %45, %47 : vector<2x2x128xf32>
    %49 = vector.extract_strided_slice %1 {offsets = [0, 0], sizes = [1, 128], strides = [1, 1]} : vector<3x128xf32> to vector<1x128xf32>
    %c14_27 = arith.constant 14 : index
    %c0_28 = arith.constant 0 : index
    %c0_29 = arith.constant 0 : index
    %50 = vector.load %arg1[%c14_27, %c0_28, %c0_29] : memref<16x2x128xf32, #tpu.memory_space<vmem>>, vector<2x2x128xf32>
    %51 = vector.shape_cast %49 : vector<1x128xf32> to vector<1x1x128xf32>
    %52 = vector.broadcast %51 : vector<1x1x128xf32> to vector<2x2x128xf32>
    %53 = arith.mulf %52, %50 : vector<2x2x128xf32>
    %54 = arith.addf %48, %53 : vector<2x2x128xf32>
    %c12_30 = arith.constant 12 : index
    %c0_31 = arith.constant 0 : index
    %c0_32 = arith.constant 0 : index
    %55 = vector.load %arg4[%c12_30, %c0_31, %c0_32] : memref<16x2x128xf32, #tpu.memory_space<vmem>>, vector<2x2x128xf32>
    tpu.vector_store %arg4[%c12_30, %c0_31, %c0_32], %54 {strides = array<i32>} : memref<16x2x128xf32, #tpu.memory_space<vmem>>, vector<2x2x128xf32>,
    %c14_33 = arith.constant 14 : index
    %c0_34 = arith.constant 0 : index
    %c0_35 = arith.constant 0 : index
    %56 = vector.load %arg1[%c14_33, %c0_34, %c0_35] : memref<16x2x128xf32, #tpu.memory_space<vmem>>, vector<2x2x128xf32>
    %57 = vector.shape_cast %4 : vector<1x128xf32> to vector<1x1x128xf32>
    %58 = vector.broadcast %57 : vector<1x1x128xf32> to vector<2x2x128xf32>
    %59 = arith.mulf %56, %58 : vector<2x2x128xf32>
    %c14_36 = arith.constant 14 : index
    %c0_37 = arith.constant 0 : index
    %c0_38 = arith.constant 0 : index
    %60 = vector.load %arg4[%c14_36, %c0_37, %c0_38] : memref<16x2x128xf32, #tpu.memory_space<vmem>>, vector<2x2x128xf32>
    tpu.vector_store %arg4[%c14_36, %c0_37, %c0_38], %59 {strides = array<i32>} : memref<16x2x128xf32, #tpu.memory_space<vmem>>, vector<2x2x128xf32>,
    %61 = vector.extract_strided_slice %0 {offsets = [1, 0], sizes = [1, 128], strides = [1, 1]} : vector<4x128xf32> to vector<1x128xf32>
    %62 = vector.extract_strided_slice %0 {offsets = [2, 0], sizes = [1, 128], strides = [1, 1]} : vector<4x128xf32> to vector<1x128xf32>
    %63 = vector.extract_strided_slice %0 {offsets = [3, 0], sizes = [1, 128], strides = [1, 1]} : vector<4x128xf32> to vector<1x128xf32>
    %c1 = arith.constant 1 : index
    %c0_39 = arith.constant 0 : index
    %c0_40 = arith.constant 0 : index
    %64 = vector.load %arg4[%c1, %c0_39, %c0_40] : memref<16x2x128xf32, #tpu.memory_space<vmem>>, vector<1x2x128xf32>
    %65 = vector.shape_cast %64 : vector<1x2x128xf32> to vector<2x128xf32>
    %c0_41 = arith.constant 0 : index
    %c0_42 = arith.constant 0 : index
    %c0_43 = arith.constant 0 : index
    %66 = vector.load %arg4[%c0_41, %c0_42, %c0_43] : memref<16x2x128xf32, #tpu.memory_space<vmem>>, vector<1x2x128xf32>
    %67 = vector.shape_cast %66 : vector<1x2x128xf32> to vector<2x128xf32>
    %68 = vector.broadcast %61 : vector<1x128xf32> to vector<2x128xf32>
    %69 = arith.mulf %68, %67 : vector<2x128xf32>
    %70 = arith.addf %65, %69 : vector<2x128xf32>
    %c1_44 = arith.constant 1 : index
    %c0_45 = arith.constant 0 : index
    %c0_46 = arith.constant 0 : index
    %71 = vector.load %arg4[%c1_44, %c0_45, %c0_46] : memref<16x2x128xf32, #tpu.memory_space<vmem>>, vector<1x2x128xf32>
    %72 = vector.shape_cast %71 : vector<1x2x128xf32> to vector<2x128xf32>
    %73 = vector.shape_cast %70 : vector<2x128xf32> to vector<1x2x128xf32>
    tpu.vector_store %arg4[%c1_44, %c0_45, %c0_46], %73 {strides = array<i32>} : memref<16x2x128xf32, #tpu.memory_space<vmem>>, vector<1x2x128xf32>,
    %c2_47 = arith.constant 2 : index
    %c0_48 = arith.constant 0 : index
    %c0_49 = arith.constant 0 : index
    %74 = vector.load %arg4[%c2_47, %c0_48, %c0_49] : memref<16x2x128xf32, #tpu.memory_space<vmem>>, vector<1x2x128xf32>
    %75 = vector.shape_cast %74 : vector<1x2x128xf32> to vector<2x128xf32>
    %c1_50 = arith.constant 1 : index
    %c0_51 = arith.constant 0 : index
    %c0_52 = arith.constant 0 : index
    %76 = vector.load %arg4[%c1_50, %c0_51, %c0_52] : memref<16x2x128xf32, #tpu.memory_space<vmem>>, vector<1x2x128xf32>
    %77 = vector.shape_cast %76 : vector<1x2x128xf32> to vector<2x128xf32>
    %78 = vector.broadcast %61 : vector<1x128xf32> to vector<2x128xf32>
    %79 = arith.mulf %78, %77 : vector<2x128xf32>
    %80 = arith.addf %75, %79 : vector<2x128xf32>
    %c0_53 = arith.constant 0 : index
    %c0_54 = arith.constant 0 : index
    %c0_55 = arith.constant 0 : index
    %81 = vector.load %arg4[%c0_53, %c0_54, %c0_55] : memref<16x2x128xf32, #tpu.memory_space<vmem>>, vector<1x2x128xf32>
    %82 = vector.shape_cast %81 : vector<1x2x128xf32> to vector<2x128xf32>
    %83 = vector.broadcast %62 : vector<1x128xf32> to vector<2x128xf32>
    %84 = arith.mulf %83, %82 : vector<2x128xf32>
    %85 = arith.addf %80, %84 : vector<2x128xf32>
    %c2_56 = arith.constant 2 : index
    %c0_57 = arith.constant 0 : index
    %c0_58 = arith.constant 0 : index
    %86 = vector.load %arg4[%c2_56, %c0_57, %c0_58] : memref<16x2x128xf32, #tpu.memory_space<vmem>>, vector<1x2x128xf32>
    %87 = vector.shape_cast %86 : vector<1x2x128xf32> to vector<2x128xf32>
    %88 = vector.shape_cast %85 : vector<2x128xf32> to vector<1x2x128xf32>
    tpu.vector_store %arg4[%c2_56, %c0_57, %c0_58], %88 {strides = array<i32>} : memref<16x2x128xf32, #tpu.memory_space<vmem>>, vector<1x2x128xf32>,
    %c3 = arith.constant 3 : index
    %c0_59 = arith.constant 0 : index
    %c0_60 = arith.constant 0 : index
    %89 = vector.load %arg4[%c3, %c0_59, %c0_60] : memref<16x2x128xf32, #tpu.memory_space<vmem>>, vector<1x2x128xf32>
    %90 = vector.shape_cast %89 : vector<1x2x128xf32> to vector<2x128xf32>
    %c2_61 = arith.constant 2 : index
    %c0_62 = arith.constant 0 : index
    %c0_63 = arith.constant 0 : index
    %91 = vector.load %arg4[%c2_61, %c0_62, %c0_63] : memref<16x2x128xf32, #tpu.memory_space<vmem>>, vector<1x2x128xf32>
    %92 = vector.shape_cast %91 : vector<1x2x128xf32> to vector<2x128xf32>
    %93 = vector.broadcast %61 : vector<1x128xf32> to vector<2x128xf32>
    %94 = arith.mulf %93, %92 : vector<2x128xf32>
    %95 = arith.addf %90, %94 : vector<2x128xf32>
    %c1_64 = arith.constant 1 : index
    %c0_65 = arith.constant 0 : index
    %c0_66 = arith.constant 0 : index
    %96 = vector.load %arg4[%c1_64, %c0_65, %c0_66] : memref<16x2x128xf32, #tpu.memory_space<vmem>>, vector<1x2x128xf32>
    %97 = vector.shape_cast %96 : vector<1x2x128xf32> to vector<2x128xf32>
    %98 = vector.broadcast %62 : vector<1x128xf32> to vector<2x128xf32>
    %99 = arith.mulf %98, %97 : vector<2x128xf32>
    %100 = arith.addf %95, %99 : vector<2x128xf32>
    %c0_67 = arith.constant 0 : index
    %c0_68 = arith.constant 0 : index
    %c0_69 = arith.constant 0 : index
    %101 = vector.load %arg4[%c0_67, %c0_68, %c0_69] : memref<16x2x128xf32, #tpu.memory_space<vmem>>, vector<1x2x128xf32>
    %102 = vector.shape_cast %101 : vector<1x2x128xf32> to vector<2x128xf32>
    %103 = vector.broadcast %63 : vector<1x128xf32> to vector<2x128xf32>
    %104 = arith.mulf %103, %102 : vector<2x128xf32>
    %105 = arith.addf %100, %104 : vector<2x128xf32>
    %c3_70 = arith.constant 3 : index
    %c0_71 = arith.constant 0 : index
    %c0_72 = arith.constant 0 : index
    %106 = vector.load %arg4[%c3_70, %c0_71, %c0_72] : memref<16x2x128xf32, #tpu.memory_space<vmem>>, vector<1x2x128xf32>
    %107 = vector.shape_cast %106 : vector<1x2x128xf32> to vector<2x128xf32>
    %108 = vector.shape_cast %105 : vector<2x128xf32> to vector<1x2x128xf32>
    tpu.vector_store %arg4[%c3_70, %c0_71, %c0_72], %108 {strides = array<i32>} : memref<16x2x128xf32, #tpu.memory_space<vmem>>, vector<1x2x128xf32>,
    %c4_73 = arith.constant 4 : index
    %c0_74 = arith.constant 0 : index
    %c0_75 = arith.constant 0 : index
    %109 = vector.load %arg4[%c4_73, %c0_74, %c0_75] : memref<16x2x128xf32, #tpu.memory_space<vmem>>, vector<1x2x128xf32>
    %110 = vector.shape_cast %109 : vector<1x2x128xf32> to vector<2x128xf32>
    %c3_76 = arith.constant 3 : index
    %c0_77 = arith.constant 0 : index
    %c0_78 = arith.constant 0 : index
    %111 = vector.load %arg4[%c3_76, %c0_77, %c0_78] : memref<16x2x128xf32, #tpu.memory_space<vmem>>, vector<1x2x128xf32>
    %112 = vector.shape_cast %111 : vector<1x2x128xf32> to vector<2x128xf32>
    %113 = vector.broadcast %61 : vector<1x128xf32> to vector<2x128xf32>
    %114 = arith.mulf %113, %112 : vector<2x128xf32>
    %115 = arith.addf %110, %114 : vector<2x128xf32>
    %c2_79 = arith.constant 2 : index
    %c0_80 = arith.constant 0 : index
    %c0_81 = arith.constant 0 : index
    %116 = vector.load %arg4[%c2_79, %c0_80, %c0_81] : memref<16x2x128xf32, #tpu.memory_space<vmem>>, vector<1x2x128xf32>
    %117 = vector.shape_cast %116 : vector<1x2x128xf32> to vector<2x128xf32>
    %118 = vector.broadcast %62 : vector<1x128xf32> to vector<2x128xf32>
    %119 = arith.mulf %118, %117 : vector<2x128xf32>
    %120 = arith.addf %115, %119 : vector<2x128xf32>
    %c1_82 = arith.constant 1 : index
    %c0_83 = arith.constant 0 : index
    %c0_84 = arith.constant 0 : index
    %121 = vector.load %arg4[%c1_82, %c0_83, %c0_84] : memref<16x2x128xf32, #tpu.memory_space<vmem>>, vector<1x2x128xf32>
    %122 = vector.shape_cast %121 : vector<1x2x128xf32> to vector<2x128xf32>
    %123 = vector.broadcast %63 : vector<1x128xf32> to vector<2x128xf32>
    %124 = arith.mulf %123, %122 : vector<2x128xf32>
    %125 = arith.addf %120, %124 : vector<2x128xf32>
    %c4_85 = arith.constant 4 : index
    %c0_86 = arith.constant 0 : index
    %c0_87 = arith.constant 0 : index
    %126 = vector.load %arg4[%c4_85, %c0_86, %c0_87] : memref<16x2x128xf32, #tpu.memory_space<vmem>>, vector<1x2x128xf32>
    %127 = vector.shape_cast %126 : vector<1x2x128xf32> to vector<2x128xf32>
    %128 = vector.shape_cast %125 : vector<2x128xf32> to vector<1x2x128xf32>
    tpu.vector_store %arg4[%c4_85, %c0_86, %c0_87], %128 {strides = array<i32>} : memref<16x2x128xf32, #tpu.memory_space<vmem>>, vector<1x2x128xf32>,
    %c5 = arith.constant 5 : index
    %c0_88 = arith.constant 0 : index
    %c0_89 = arith.constant 0 : index
    %129 = vector.load %arg4[%c5, %c0_88, %c0_89] : memref<16x2x128xf32, #tpu.memory_space<vmem>>, vector<1x2x128xf32>
    %130 = vector.shape_cast %129 : vector<1x2x128xf32> to vector<2x128xf32>
    %c4_90 = arith.constant 4 : index
    %c0_91 = arith.constant 0 : index
    %c0_92 = arith.constant 0 : index
    %131 = vector.load %arg4[%c4_90, %c0_91, %c0_92] : memref<16x2x128xf32, #tpu.memory_space<vmem>>, vector<1x2x128xf32>
    %132 = vector.shape_cast %131 : vector<1x2x128xf32> to vector<2x128xf32>
    %133 = vector.broadcast %61 : vector<1x128xf32> to vector<2x128xf32>
    %134 = arith.mulf %133, %132 : vector<2x128xf32>
    %135 = arith.addf %130, %134 : vector<2x128xf32>
    %c3_93 = arith.constant 3 : index
    %c0_94 = arith.constant 0 : index
    %c0_95 = arith.constant 0 : index
    %136 = vector.load %arg4[%c3_93, %c0_94, %c0_95] : memref<16x2x128xf32, #tpu.memory_space<vmem>>, vector<1x2x128xf32>
    %137 = vector.shape_cast %136 : vector<1x2x128xf32> to vector<2x128xf32>
    %138 = vector.broadcast %62 : vector<1x128xf32> to vector<2x128xf32>
    %139 = arith.mulf %138, %137 : vector<2x128xf32>
    %140 = arith.addf %135, %139 : vector<2x128xf32>
    %c2_96 = arith.constant 2 : index
    %c0_97 = arith.constant 0 : index
    %c0_98 = arith.constant 0 : index
    %141 = vector.load %arg4[%c2_96, %c0_97, %c0_98] : memref<16x2x128xf32, #tpu.memory_space<vmem>>, vector<1x2x128xf32>
    %142 = vector.shape_cast %141 : vector<1x2x128xf32> to vector<2x128xf32>
    %143 = vector.broadcast %63 : vector<1x128xf32> to vector<2x128xf32>
    %144 = arith.mulf %143, %142 : vector<2x128xf32>
    %145 = arith.addf %140, %144 : vector<2x128xf32>
    %c5_99 = arith.constant 5 : index
    %c0_100 = arith.constant 0 : index
    %c0_101 = arith.constant 0 : index
    %146 = vector.load %arg4[%c5_99, %c0_100, %c0_101] : memref<16x2x128xf32, #tpu.memory_space<vmem>>, vector<1x2x128xf32>
    %147 = vector.shape_cast %146 : vector<1x2x128xf32> to vector<2x128xf32>
    %148 = vector.shape_cast %145 : vector<2x128xf32> to vector<1x2x128xf32>
    tpu.vector_store %arg4[%c5_99, %c0_100, %c0_101], %148 {strides = array<i32>} : memref<16x2x128xf32, #tpu.memory_space<vmem>>, vector<1x2x128xf32>,
    %c6_102 = arith.constant 6 : index
    %c0_103 = arith.constant 0 : index
    %c0_104 = arith.constant 0 : index
    %149 = vector.load %arg4[%c6_102, %c0_103, %c0_104] : memref<16x2x128xf32, #tpu.memory_space<vmem>>, vector<1x2x128xf32>
    %150 = vector.shape_cast %149 : vector<1x2x128xf32> to vector<2x128xf32>
    %c5_105 = arith.constant 5 : index
    %c0_106 = arith.constant 0 : index
    %c0_107 = arith.constant 0 : index
    %151 = vector.load %arg4[%c5_105, %c0_106, %c0_107] : memref<16x2x128xf32, #tpu.memory_space<vmem>>, vector<1x2x128xf32>
    %152 = vector.shape_cast %151 : vector<1x2x128xf32> to vector<2x128xf32>
    %153 = vector.broadcast %61 : vector<1x128xf32> to vector<2x128xf32>
    %154 = arith.mulf %153, %152 : vector<2x128xf32>
    %155 = arith.addf %150, %154 : vector<2x128xf32>
    %c4_108 = arith.constant 4 : index
    %c0_109 = arith.constant 0 : index
    %c0_110 = arith.constant 0 : index
    %156 = vector.load %arg4[%c4_108, %c0_109, %c0_110] : memref<16x2x128xf32, #tpu.memory_space<vmem>>, vector<1x2x128xf32>
    %157 = vector.shape_cast %156 : vector<1x2x128xf32> to vector<2x128xf32>
    %158 = vector.broadcast %62 : vector<1x128xf32> to vector<2x128xf32>
    %159 = arith.mulf %158, %157 : vector<2x128xf32>
    %160 = arith.addf %155, %159 : vector<2x128xf32>
    %c3_111 = arith.constant 3 : index
    %c0_112 = arith.constant 0 : index
    %c0_113 = arith.constant 0 : index
    %161 = vector.load %arg4[%c3_111, %c0_112, %c0_113] : memref<16x2x128xf32, #tpu.memory_space<vmem>>, vector<1x2x128xf32>
    %162 = vector.shape_cast %161 : vector<1x2x128xf32> to vector<2x128xf32>
    %163 = vector.broadcast %63 : vector<1x128xf32> to vector<2x128xf32>
    %164 = arith.mulf %163, %162 : vector<2x128xf32>
    %165 = arith.addf %160, %164 : vector<2x128xf32>
    %c6_114 = arith.constant 6 : index
    %c0_115 = arith.constant 0 : index
    %c0_116 = arith.constant 0 : index
    %166 = vector.load %arg4[%c6_114, %c0_115, %c0_116] : memref<16x2x128xf32, #tpu.memory_space<vmem>>, vector<1x2x128xf32>
    %167 = vector.shape_cast %166 : vector<1x2x128xf32> to vector<2x128xf32>
    %168 = vector.shape_cast %165 : vector<2x128xf32> to vector<1x2x128xf32>
    tpu.vector_store %arg4[%c6_114, %c0_115, %c0_116], %168 {strides = array<i32>} : memref<16x2x128xf32, #tpu.memory_space<vmem>>, vector<1x2x128xf32>,
    %c7 = arith.constant 7 : index
    %c0_117 = arith.constant 0 : index
    %c0_118 = arith.constant 0 : index
    %169 = vector.load %arg4[%c7, %c0_117, %c0_118] : memref<16x2x128xf32, #tpu.memory_space<vmem>>, vector<1x2x128xf32>
    %170 = vector.shape_cast %169 : vector<1x2x128xf32> to vector<2x128xf32>
    %c6_119 = arith.constant 6 : index
    %c0_120 = arith.constant 0 : index
    %c0_121 = arith.constant 0 : index
    %171 = vector.load %arg4[%c6_119, %c0_120, %c0_121] : memref<16x2x128xf32, #tpu.memory_space<vmem>>, vector<1x2x128xf32>
    %172 = vector.shape_cast %171 : vector<1x2x128xf32> to vector<2x128xf32>
    %173 = vector.broadcast %61 : vector<1x128xf32> to vector<2x128xf32>
    %174 = arith.mulf %173, %172 : vector<2x128xf32>
    %175 = arith.addf %170, %174 : vector<2x128xf32>
    %c5_122 = arith.constant 5 : index
    %c0_123 = arith.constant 0 : index
    %c0_124 = arith.constant 0 : index
    %176 = vector.load %arg4[%c5_122, %c0_123, %c0_124] : memref<16x2x128xf32, #tpu.memory_space<vmem>>, vector<1x2x128xf32>
    %177 = vector.shape_cast %176 : vector<1x2x128xf32> to vector<2x128xf32>
    %178 = vector.broadcast %62 : vector<1x128xf32> to vector<2x128xf32>
    %179 = arith.mulf %178, %177 : vector<2x128xf32>
    %180 = arith.addf %175, %179 : vector<2x128xf32>
    %c4_125 = arith.constant 4 : index
    %c0_126 = arith.constant 0 : index
    %c0_127 = arith.constant 0 : index
    %181 = vector.load %arg4[%c4_125, %c0_126, %c0_127] : memref<16x2x128xf32, #tpu.memory_space<vmem>>, vector<1x2x128xf32>
    %182 = vector.shape_cast %181 : vector<1x2x128xf32> to vector<2x128xf32>
    %183 = vector.broadcast %63 : vector<1x128xf32> to vector<2x128xf32>
    %184 = arith.mulf %183, %182 : vector<2x128xf32>
    %185 = arith.addf %180, %184 : vector<2x128xf32>
    %c7_128 = arith.constant 7 : index
    %c0_129 = arith.constant 0 : index
    %c0_130 = arith.constant 0 : index
    %186 = vector.load %arg4[%c7_128, %c0_129, %c0_130] : memref<16x2x128xf32, #tpu.memory_space<vmem>>, vector<1x2x128xf32>
    %187 = vector.shape_cast %186 : vector<1x2x128xf32> to vector<2x128xf32>
    %188 = vector.shape_cast %185 : vector<2x128xf32> to vector<1x2x128xf32>
    tpu.vector_store %arg4[%c7_128, %c0_129, %c0_130], %188 {strides = array<i32>} : memref<16x2x128xf32, #tpu.memory_space<vmem>>, vector<1x2x128xf32>,
    %c8 = arith.constant 8 : index
    %c0_131 = arith.constant 0 : index
    %c0_132 = arith.constant 0 : index
    %189 = vector.load %arg4[%c8, %c0_131, %c0_132] : memref<16x2x128xf32, #tpu.memory_space<vmem>>, vector<1x2x128xf32>
    %190 = vector.shape_cast %189 : vector<1x2x128xf32> to vector<2x128xf32>
    %c7_133 = arith.constant 7 : index
    %c0_134 = arith.constant 0 : index
    %c0_135 = arith.constant 0 : index
    %191 = vector.load %arg4[%c7_133, %c0_134, %c0_135] : memref<16x2x128xf32, #tpu.memory_space<vmem>>, vector<1x2x128xf32>
    %192 = vector.shape_cast %191 : vector<1x2x128xf32> to vector<2x128xf32>
    %193 = vector.broadcast %61 : vector<1x128xf32> to vector<2x128xf32>
    %194 = arith.mulf %193, %192 : vector<2x128xf32>
    %195 = arith.addf %190, %194 : vector<2x128xf32>
    %c6_136 = arith.constant 6 : index
    %c0_137 = arith.constant 0 : index
    %c0_138 = arith.constant 0 : index
    %196 = vector.load %arg4[%c6_136, %c0_137, %c0_138] : memref<16x2x128xf32, #tpu.memory_space<vmem>>, vector<1x2x128xf32>
    %197 = vector.shape_cast %196 : vector<1x2x128xf32> to vector<2x128xf32>
    %198 = vector.broadcast %62 : vector<1x128xf32> to vector<2x128xf32>
    %199 = arith.mulf %198, %197 : vector<2x128xf32>
    %200 = arith.addf %195, %199 : vector<2x128xf32>
    %c5_139 = arith.constant 5 : index
    %c0_140 = arith.constant 0 : index
    %c0_141 = arith.constant 0 : index
    %201 = vector.load %arg4[%c5_139, %c0_140, %c0_141] : memref<16x2x128xf32, #tpu.memory_space<vmem>>, vector<1x2x128xf32>
    %202 = vector.shape_cast %201 : vector<1x2x128xf32> to vector<2x128xf32>
    %203 = vector.broadcast %63 : vector<1x128xf32> to vector<2x128xf32>
    %204 = arith.mulf %203, %202 : vector<2x128xf32>
    %205 = arith.addf %200, %204 : vector<2x128xf32>
    %c8_142 = arith.constant 8 : index
    %c0_143 = arith.constant 0 : index
    %c0_144 = arith.constant 0 : index
    %206 = vector.load %arg4[%c8_142, %c0_143, %c0_144] : memref<16x2x128xf32, #tpu.memory_space<vmem>>, vector<1x2x128xf32>
    %207 = vector.shape_cast %206 : vector<1x2x128xf32> to vector<2x128xf32>
    %208 = vector.shape_cast %205 : vector<2x128xf32> to vector<1x2x128xf32>
    tpu.vector_store %arg4[%c8_142, %c0_143, %c0_144], %208 {strides = array<i32>} : memref<16x2x128xf32, #tpu.memory_space<vmem>>, vector<1x2x128xf32>,
    %c9 = arith.constant 9 : index
    %c0_145 = arith.constant 0 : index
    %c0_146 = arith.constant 0 : index
    %209 = vector.load %arg4[%c9, %c0_145, %c0_146] : memref<16x2x128xf32, #tpu.memory_space<vmem>>, vector<1x2x128xf32>
    %210 = vector.shape_cast %209 : vector<1x2x128xf32> to vector<2x128xf32>
    %c8_147 = arith.constant 8 : index
    %c0_148 = arith.constant 0 : index
    %c0_149 = arith.constant 0 : index
    %211 = vector.load %arg4[%c8_147, %c0_148, %c0_149] : memref<16x2x128xf32, #tpu.memory_space<vmem>>, vector<1x2x128xf32>
    %212 = vector.shape_cast %211 : vector<1x2x128xf32> to vector<2x128xf32>
    %213 = vector.broadcast %61 : vector<1x128xf32> to vector<2x128xf32>
    %214 = arith.mulf %213, %212 : vector<2x128xf32>
    %215 = arith.addf %210, %214 : vector<2x128xf32>
    %c7_150 = arith.constant 7 : index
    %c0_151 = arith.constant 0 : index
    %c0_152 = arith.constant 0 : index
    %216 = vector.load %arg4[%c7_150, %c0_151, %c0_152] : memref<16x2x128xf32, #tpu.memory_space<vmem>>, vector<1x2x128xf32>
    %217 = vector.shape_cast %216 : vector<1x2x128xf32> to vector<2x128xf32>
    %218 = vector.broadcast %62 : vector<1x128xf32> to vector<2x128xf32>
    %219 = arith.mulf %218, %217 : vector<2x128xf32>
    %220 = arith.addf %215, %219 : vector<2x128xf32>
    %c6_153 = arith.constant 6 : index
    %c0_154 = arith.constant 0 : index
    %c0_155 = arith.constant 0 : index
    %221 = vector.load %arg4[%c6_153, %c0_154, %c0_155] : memref<16x2x128xf32, #tpu.memory_space<vmem>>, vector<1x2x128xf32>
    %222 = vector.shape_cast %221 : vector<1x2x128xf32> to vector<2x128xf32>
    %223 = vector.broadcast %63 : vector<1x128xf32> to vector<2x128xf32>
    %224 = arith.mulf %223, %222 : vector<2x128xf32>
    %225 = arith.addf %220, %224 : vector<2x128xf32>
    %c9_156 = arith.constant 9 : index
    %c0_157 = arith.constant 0 : index
    %c0_158 = arith.constant 0 : index
    %226 = vector.load %arg4[%c9_156, %c0_157, %c0_158] : memref<16x2x128xf32, #tpu.memory_space<vmem>>, vector<1x2x128xf32>
    %227 = vector.shape_cast %226 : vector<1x2x128xf32> to vector<2x128xf32>
    %228 = vector.shape_cast %225 : vector<2x128xf32> to vector<1x2x128xf32>
    tpu.vector_store %arg4[%c9_156, %c0_157, %c0_158], %228 {strides = array<i32>} : memref<16x2x128xf32, #tpu.memory_space<vmem>>, vector<1x2x128xf32>,
    %c10_159 = arith.constant 10 : index
    %c0_160 = arith.constant 0 : index
    %c0_161 = arith.constant 0 : index
    %229 = vector.load %arg4[%c10_159, %c0_160, %c0_161] : memref<16x2x128xf32, #tpu.memory_space<vmem>>, vector<1x2x128xf32>
    %230 = vector.shape_cast %229 : vector<1x2x128xf32> to vector<2x128xf32>
    %c9_162 = arith.constant 9 : index
    %c0_163 = arith.constant 0 : index
    %c0_164 = arith.constant 0 : index
    %231 = vector.load %arg4[%c9_162, %c0_163, %c0_164] : memref<16x2x128xf32, #tpu.memory_space<vmem>>, vector<1x2x128xf32>
    %232 = vector.shape_cast %231 : vector<1x2x128xf32> to vector<2x128xf32>
    %233 = vector.broadcast %61 : vector<1x128xf32> to vector<2x128xf32>
    %234 = arith.mulf %233, %232 : vector<2x128xf32>
    %235 = arith.addf %230, %234 : vector<2x128xf32>
    %c8_165 = arith.constant 8 : index
    %c0_166 = arith.constant 0 : index
    %c0_167 = arith.constant 0 : index
    %236 = vector.load %arg4[%c8_165, %c0_166, %c0_167] : memref<16x2x128xf32, #tpu.memory_space<vmem>>, vector<1x2x128xf32>
    %237 = vector.shape_cast %236 : vector<1x2x128xf32> to vector<2x128xf32>
    %238 = vector.broadcast %62 : vector<1x128xf32> to vector<2x128xf32>
    %239 = arith.mulf %238, %237 : vector<2x128xf32>
    %240 = arith.addf %235, %239 : vector<2x128xf32>
    %c7_168 = arith.constant 7 : index
    %c0_169 = arith.constant 0 : index
    %c0_170 = arith.constant 0 : index
    %241 = vector.load %arg4[%c7_168, %c0_169, %c0_170] : memref<16x2x128xf32, #tpu.memory_space<vmem>>, vector<1x2x128xf32>
    %242 = vector.shape_cast %241 : vector<1x2x128xf32> to vector<2x128xf32>
    %243 = vector.broadcast %63 : vector<1x128xf32> to vector<2x128xf32>
    %244 = arith.mulf %243, %242 : vector<2x128xf32>
    %245 = arith.addf %240, %244 : vector<2x128xf32>
    %c10_171 = arith.constant 10 : index
    %c0_172 = arith.constant 0 : index
    %c0_173 = arith.constant 0 : index
    %246 = vector.load %arg4[%c10_171, %c0_172, %c0_173] : memref<16x2x128xf32, #tpu.memory_space<vmem>>, vector<1x2x128xf32>
    %247 = vector.shape_cast %246 : vector<1x2x128xf32> to vector<2x128xf32>
    %248 = vector.shape_cast %245 : vector<2x128xf32> to vector<1x2x128xf32>
    tpu.vector_store %arg4[%c10_171, %c0_172, %c0_173], %248 {strides = array<i32>} : memref<16x2x128xf32, #tpu.memory_space<vmem>>, vector<1x2x128xf32>,
    %c11 = arith.constant 11 : index
    %c0_174 = arith.constant 0 : index
    %c0_175 = arith.constant 0 : index
    %249 = vector.load %arg4[%c11, %c0_174, %c0_175] : memref<16x2x128xf32, #tpu.memory_space<vmem>>, vector<1x2x128xf32>
    %250 = vector.shape_cast %249 : vector<1x2x128xf32> to vector<2x128xf32>
    %c10_176 = arith.constant 10 : index
    %c0_177 = arith.constant 0 : index
    %c0_178 = arith.constant 0 : index
    %251 = vector.load %arg4[%c10_176, %c0_177, %c0_178] : memref<16x2x128xf32, #tpu.memory_space<vmem>>, vector<1x2x128xf32>
    %252 = vector.shape_cast %251 : vector<1x2x128xf32> to vector<2x128xf32>
    %253 = vector.broadcast %61 : vector<1x128xf32> to vector<2x128xf32>
    %254 = arith.mulf %253, %252 : vector<2x128xf32>
    %255 = arith.addf %250, %254 : vector<2x128xf32>
    %c9_179 = arith.constant 9 : index
    %c0_180 = arith.constant 0 : index
    %c0_181 = arith.constant 0 : index
    %256 = vector.load %arg4[%c9_179, %c0_180, %c0_181] : memref<16x2x128xf32, #tpu.memory_space<vmem>>, vector<1x2x128xf32>
    %257 = vector.shape_cast %256 : vector<1x2x128xf32> to vector<2x128xf32>
    %258 = vector.broadcast %62 : vector<1x128xf32> to vector<2x128xf32>
    %259 = arith.mulf %258, %257 : vector<2x128xf32>
    %260 = arith.addf %255, %259 : vector<2x128xf32>
    %c8_182 = arith.constant 8 : index
    %c0_183 = arith.constant 0 : index
    %c0_184 = arith.constant 0 : index
    %261 = vector.load %arg4[%c8_182, %c0_183, %c0_184] : memref<16x2x128xf32, #tpu.memory_space<vmem>>, vector<1x2x128xf32>
    %262 = vector.shape_cast %261 : vector<1x2x128xf32> to vector<2x128xf32>
    %263 = vector.broadcast %63 : vector<1x128xf32> to vector<2x128xf32>
    %264 = arith.mulf %263, %262 : vector<2x128xf32>
    %265 = arith.addf %260, %264 : vector<2x128xf32>
    %c11_185 = arith.constant 11 : index
    %c0_186 = arith.constant 0 : index
    %c0_187 = arith.constant 0 : index
    %266 = vector.load %arg4[%c11_185, %c0_186, %c0_187] : memref<16x2x128xf32, #tpu.memory_space<vmem>>, vector<1x2x128xf32>
    %267 = vector.shape_cast %266 : vector<1x2x128xf32> to vector<2x128xf32>
    %268 = vector.shape_cast %265 : vector<2x128xf32> to vector<1x2x128xf32>
    tpu.vector_store %arg4[%c11_185, %c0_186, %c0_187], %268 {strides = array<i32>} : memref<16x2x128xf32, #tpu.memory_space<vmem>>, vector<1x2x128xf32>,
    %c12_188 = arith.constant 12 : index
    %c0_189 = arith.constant 0 : index
    %c0_190 = arith.constant 0 : index
    %269 = vector.load %arg4[%c12_188, %c0_189, %c0_190] : memref<16x2x128xf32, #tpu.memory_space<vmem>>, vector<1x2x128xf32>
    %270 = vector.shape_cast %269 : vector<1x2x128xf32> to vector<2x128xf32>
    %c11_191 = arith.constant 11 : index
    %c0_192 = arith.constant 0 : index
    %c0_193 = arith.constant 0 : index
    %271 = vector.load %arg4[%c11_191, %c0_192, %c0_193] : memref<16x2x128xf32, #tpu.memory_space<vmem>>, vector<1x2x128xf32>
    %272 = vector.shape_cast %271 : vector<1x2x128xf32> to vector<2x128xf32>
    %273 = vector.broadcast %61 : vector<1x128xf32> to vector<2x128xf32>
    %274 = arith.mulf %273, %272 : vector<2x128xf32>
    %275 = arith.addf %270, %274 : vector<2x128xf32>
    %c10_194 = arith.constant 10 : index
    %c0_195 = arith.constant 0 : index
    %c0_196 = arith.constant 0 : index
    %276 = vector.load %arg4[%c10_194, %c0_195, %c0_196] : memref<16x2x128xf32, #tpu.memory_space<vmem>>, vector<1x2x128xf32>
    %277 = vector.shape_cast %276 : vector<1x2x128xf32> to vector<2x128xf32>
    %278 = vector.broadcast %62 : vector<1x128xf32> to vector<2x128xf32>
    %279 = arith.mulf %278, %277 : vector<2x128xf32>
    %280 = arith.addf %275, %279 : vector<2x128xf32>
    %c9_197 = arith.constant 9 : index
    %c0_198 = arith.constant 0 : index
    %c0_199 = arith.constant 0 : index
    %281 = vector.load %arg4[%c9_197, %c0_198, %c0_199] : memref<16x2x128xf32, #tpu.memory_space<vmem>>, vector<1x2x128xf32>
    %282 = vector.shape_cast %281 : vector<1x2x128xf32> to vector<2x128xf32>
    %283 = vector.broadcast %63 : vector<1x128xf32> to vector<2x128xf32>
    %284 = arith.mulf %283, %282 : vector<2x128xf32>
    %285 = arith.addf %280, %284 : vector<2x128xf32>
    %c12_200 = arith.constant 12 : index
    %c0_201 = arith.constant 0 : index
    %c0_202 = arith.constant 0 : index
    %286 = vector.load %arg4[%c12_200, %c0_201, %c0_202] : memref<16x2x128xf32, #tpu.memory_space<vmem>>, vector<1x2x128xf32>
    %287 = vector.shape_cast %286 : vector<1x2x128xf32> to vector<2x128xf32>
    %288 = vector.shape_cast %285 : vector<2x128xf32> to vector<1x2x128xf32>
    tpu.vector_store %arg4[%c12_200, %c0_201, %c0_202], %288 {strides = array<i32>} : memref<16x2x128xf32, #tpu.memory_space<vmem>>, vector<1x2x128xf32>,
    %c13 = arith.constant 13 : index
    %c0_203 = arith.constant 0 : index
    %c0_204 = arith.constant 0 : index
    %289 = vector.load %arg4[%c13, %c0_203, %c0_204] : memref<16x2x128xf32, #tpu.memory_space<vmem>>, vector<1x2x128xf32>
    %290 = vector.shape_cast %289 : vector<1x2x128xf32> to vector<2x128xf32>
    %c12_205 = arith.constant 12 : index
    %c0_206 = arith.constant 0 : index
    %c0_207 = arith.constant 0 : index
    %291 = vector.load %arg4[%c12_205, %c0_206, %c0_207] : memref<16x2x128xf32, #tpu.memory_space<vmem>>, vector<1x2x128xf32>
    %292 = vector.shape_cast %291 : vector<1x2x128xf32> to vector<2x128xf32>
    %293 = vector.broadcast %61 : vector<1x128xf32> to vector<2x128xf32>
    %294 = arith.mulf %293, %292 : vector<2x128xf32>
    %295 = arith.addf %290, %294 : vector<2x128xf32>
    %c11_208 = arith.constant 11 : index
    %c0_209 = arith.constant 0 : index
    %c0_210 = arith.constant 0 : index
    %296 = vector.load %arg4[%c11_208, %c0_209, %c0_210] : memref<16x2x128xf32, #tpu.memory_space<vmem>>, vector<1x2x128xf32>
    %297 = vector.shape_cast %296 : vector<1x2x128xf32> to vector<2x128xf32>
    %298 = vector.broadcast %62 : vector<1x128xf32> to vector<2x128xf32>
    %299 = arith.mulf %298, %297 : vector<2x128xf32>
    %300 = arith.addf %295, %299 : vector<2x128xf32>
    %c10_211 = arith.constant 10 : index
    %c0_212 = arith.constant 0 : index
    %c0_213 = arith.constant 0 : index
    %301 = vector.load %arg4[%c10_211, %c0_212, %c0_213] : memref<16x2x128xf32, #tpu.memory_space<vmem>>, vector<1x2x128xf32>
    %302 = vector.shape_cast %301 : vector<1x2x128xf32> to vector<2x128xf32>
    %303 = vector.broadcast %63 : vector<1x128xf32> to vector<2x128xf32>
    %304 = arith.mulf %303, %302 : vector<2x128xf32>
    %305 = arith.addf %300, %304 : vector<2x128xf32>
    %c13_214 = arith.constant 13 : index
    %c0_215 = arith.constant 0 : index
    %c0_216 = arith.constant 0 : index
    %306 = vector.load %arg4[%c13_214, %c0_215, %c0_216] : memref<16x2x128xf32, #tpu.memory_space<vmem>>, vector<1x2x128xf32>
    %307 = vector.shape_cast %306 : vector<1x2x128xf32> to vector<2x128xf32>
    %308 = vector.shape_cast %305 : vector<2x128xf32> to vector<1x2x128xf32>
    tpu.vector_store %arg4[%c13_214, %c0_215, %c0_216], %308 {strides = array<i32>} : memref<16x2x128xf32, #tpu.memory_space<vmem>>, vector<1x2x128xf32>,
    %c14_217 = arith.constant 14 : index
    %c0_218 = arith.constant 0 : index
    %c0_219 = arith.constant 0 : index
    %309 = vector.load %arg4[%c14_217, %c0_218, %c0_219] : memref<16x2x128xf32, #tpu.memory_space<vmem>>, vector<1x2x128xf32>
    %310 = vector.shape_cast %309 : vector<1x2x128xf32> to vector<2x128xf32>
    %c13_220 = arith.constant 13 : index
    %c0_221 = arith.constant 0 : index
    %c0_222 = arith.constant 0 : index
    %311 = vector.load %arg4[%c13_220, %c0_221, %c0_222] : memref<16x2x128xf32, #tpu.memory_space<vmem>>, vector<1x2x128xf32>
    %312 = vector.shape_cast %311 : vector<1x2x128xf32> to vector<2x128xf32>
    %313 = vector.broadcast %61 : vector<1x128xf32> to vector<2x128xf32>
    %314 = arith.mulf %313, %312 : vector<2x128xf32>
    %315 = arith.addf %310, %314 : vector<2x128xf32>
    %c12_223 = arith.constant 12 : index
    %c0_224 = arith.constant 0 : index
    %c0_225 = arith.constant 0 : index
    %316 = vector.load %arg4[%c12_223, %c0_224, %c0_225] : memref<16x2x128xf32, #tpu.memory_space<vmem>>, vector<1x2x128xf32>
    %317 = vector.shape_cast %316 : vector<1x2x128xf32> to vector<2x128xf32>
    %318 = vector.broadcast %62 : vector<1x128xf32> to vector<2x128xf32>
    %319 = arith.mulf %318, %317 : vector<2x128xf32>
    %320 = arith.addf %315, %319 : vector<2x128xf32>
    %c11_226 = arith.constant 11 : index
    %c0_227 = arith.constant 0 : index
    %c0_228 = arith.constant 0 : index
    %321 = vector.load %arg4[%c11_226, %c0_227, %c0_228] : memref<16x2x128xf32, #tpu.memory_space<vmem>>, vector<1x2x128xf32>
    %322 = vector.shape_cast %321 : vector<1x2x128xf32> to vector<2x128xf32>
    %323 = vector.broadcast %63 : vector<1x128xf32> to vector<2x128xf32>
    %324 = arith.mulf %323, %322 : vector<2x128xf32>
    %325 = arith.addf %320, %324 : vector<2x128xf32>
    %c14_229 = arith.constant 14 : index
    %c0_230 = arith.constant 0 : index
    %c0_231 = arith.constant 0 : index
    %326 = vector.load %arg4[%c14_229, %c0_230, %c0_231] : memref<16x2x128xf32, #tpu.memory_space<vmem>>, vector<1x2x128xf32>
    %327 = vector.shape_cast %326 : vector<1x2x128xf32> to vector<2x128xf32>
    %328 = vector.shape_cast %325 : vector<2x128xf32> to vector<1x2x128xf32>
    tpu.vector_store %arg4[%c14_229, %c0_230, %c0_231], %328 {strides = array<i32>} : memref<16x2x128xf32, #tpu.memory_space<vmem>>, vector<1x2x128xf32>,
    %c15 = arith.constant 15 : index
    %c0_232 = arith.constant 0 : index
    %c0_233 = arith.constant 0 : index
    %329 = vector.load %arg4[%c15, %c0_232, %c0_233] : memref<16x2x128xf32, #tpu.memory_space<vmem>>, vector<1x2x128xf32>
    %330 = vector.shape_cast %329 : vector<1x2x128xf32> to vector<2x128xf32>
    %c14_234 = arith.constant 14 : index
    %c0_235 = arith.constant 0 : index
    %c0_236 = arith.constant 0 : index
    %331 = vector.load %arg4[%c14_234, %c0_235, %c0_236] : memref<16x2x128xf32, #tpu.memory_space<vmem>>, vector<1x2x128xf32>
    %332 = vector.shape_cast %331 : vector<1x2x128xf32> to vector<2x128xf32>
    %333 = vector.broadcast %61 : vector<1x128xf32> to vector<2x128xf32>
    %334 = arith.mulf %333, %332 : vector<2x128xf32>
    %335 = arith.addf %330, %334 : vector<2x128xf32>
    %c13_237 = arith.constant 13 : index
    %c0_238 = arith.constant 0 : index
    %c0_239 = arith.constant 0 : index
    %336 = vector.load %arg4[%c13_237, %c0_238, %c0_239] : memref<16x2x128xf32, #tpu.memory_space<vmem>>, vector<1x2x128xf32>
    %337 = vector.shape_cast %336 : vector<1x2x128xf32> to vector<2x128xf32>
    %338 = vector.broadcast %62 : vector<1x128xf32> to vector<2x128xf32>
    %339 = arith.mulf %338, %337 : vector<2x128xf32>
    %340 = arith.addf %335, %339 : vector<2x128xf32>
    %c12_240 = arith.constant 12 : index
    %c0_241 = arith.constant 0 : index
    %c0_242 = arith.constant 0 : index
    %341 = vector.load %arg4[%c12_240, %c0_241, %c0_242] : memref<16x2x128xf32, #tpu.memory_space<vmem>>, vector<1x2x128xf32>
    %342 = vector.shape_cast %341 : vector<1x2x128xf32> to vector<2x128xf32>
    %343 = vector.broadcast %63 : vector<1x128xf32> to vector<2x128xf32>
    %344 = arith.mulf %343, %342 : vector<2x128xf32>
    %345 = arith.addf %340, %344 : vector<2x128xf32>
    %c15_243 = arith.constant 15 : index
    %c0_244 = arith.constant 0 : index
    %c0_245 = arith.constant 0 : index
    %346 = vector.load %arg4[%c15_243, %c0_244, %c0_245] : memref<16x2x128xf32, #tpu.memory_space<vmem>>, vector<1x2x128xf32>
    %347 = vector.shape_cast %346 : vector<1x2x128xf32> to vector<2x128xf32>
    %348 = vector.shape_cast %345 : vector<2x128xf32> to vector<1x2x128xf32>
    tpu.vector_store %arg4[%c15_243, %c0_244, %c0_245], %348 {strides = array<i32>} : memref<16x2x128xf32, #tpu.memory_space<vmem>>, vector<1x2x128xf32>,
    return
  }
  func.func @transform_0(%arg0: i32) -> (i32, i32, i32) {
    %c0_i32 = arith.constant 0 : i32
    %c0_i32_0 = arith.constant 0 : i32
    %c0_i32_1 = arith.constant 0 : i32
    return %c0_i32, %arg0, %c0_i32_0 : i32, i32, i32
  }
  func.func @transform_1(%arg0: i32) -> (i32, i32) {
    %c0_i32 = arith.constant 0 : i32
    %c0_i32_0 = arith.constant 0 : i32
    %c0_i32_1 = arith.constant 0 : i32
    return %c0_i32, %c0_i32_0 : i32, i32
  }
  func.func @transform_2(%arg0: i32) -> (i32, i32) {
    %c0_i32 = arith.constant 0 : i32
    %c0_i32_0 = arith.constant 0 : i32
    %c0_i32_1 = arith.constant 0 : i32
    return %c0_i32, %c0_i32_0 : i32, i32
  }
  func.func @transform_3(%arg0: i32) -> (i32, i32, i32) {
    %c0_i32 = arith.constant 0 : i32
    %c0_i32_0 = arith.constant 0 : i32
    %c0_i32_1 = arith.constant 0 : i32
    return %c0_i32, %arg0, %c0_i32_0 : i32, i32, i32
  }
}

</mosaic_0001>

<bundles_post_ra>
// kernel: tile.19
= control target key start
LH: loop header
LB: loop body
LE: loop exit
PB: predicated region body
PF: predicated region fallthrough
CT: control target
= control target key end

     0   :  { %vm16_vm0 = vcmask 261120   ;;  %s49_s12 = smov 32   ;;  %s50_s13 = smov 64   ;;  %vm22_vm1 = vcmask 1048320   ;;  %vm28_vm2 = vcmask 785920   ;;  %vm34_vm3 = vcmask 523520   ;;  %s73_s0 = inlined_call_operand.vmem [shape: f32[3,4,32], index: 0, kind: input, shape index: {}]   ;;  %s74_s1 = inlined_call_operand.vmem [shape: f32[3,128], index: 1, kind: output, shape index: {}]  }
   0x1   :  { %v43_v0 = vld [vmem:[%s73_s0 + $0x8] sm:$0xf]  ;;  %v44_v1 = vld [vmem:[%s73_s0 + $0x4] sm:$0xf]  ;;  %v13_v2 = vld [vmem:[%s73_s0] sm:$0xf] }
   0x2   :  { %8 = vst [vmem:[#allocation1 + $0x10] sm:$0xf] %v43_v0  ;;  %12 = vst [vmem:[#allocation1 + $0x8] sm:$0xf] %v44_v1  ;;  %s48_s0 = smov 96  }
   0x3   :  { %14 = vst [vmem:[#allocation1] sm:$0xf] %v13_v2 }
   0xa   :  { %v19_v3 = vld [vmem:[#allocation1 + $0x3] ss:$8 sm:$0x7]   ;;  %v31_v4 = vld [vmem:[#allocation1 + $0x1] ss:$8 sm:$0x7]  }
   0xb   :  { %20 = vrot.lane.b32.xlu0 %v19_v3, %s48_s0  ;;  %v15_v5 = vld [vmem:[#allocation1] ss:$8 sm:$0x7]   ;;  %v25_v6 = vld [vmem:[#allocation1 + $0x2] ss:$8 sm:$0x7]   ;;  %32 = vrot.lane.b32.xlu1 %v31_v4, %s49_s12 }
   0xc   :  { %17 = vst.msk [vmem:[#allocation0] sm:$0x7] %vm16_vm0, %v15_v5  }
   0xf   :  { %26 = vrot.lane.b32.xlu0 %v25_v6, %s50_s13 }
  0x7d   :  { %v21_v7 = vpop.permute.xlu0 %20   ;;  %v33_v8 = vpop.permute.xlu1 %32  }
  0x7e   :  { %23 = vst.msk [vmem:[#allocation0] sm:$0x7] %vm22_vm1, %v21_v7  }
  0x81   :  { %v27_v9 = vpop.permute.xlu0 %26  }
  0x82   :  { %29 = vst.msk [vmem:[#allocation0] sm:$0x7] %vm28_vm2, %v27_v9  }
  0x83   :  { %35 = vst.msk [vmem:[#allocation0] sm:$0x7] %vm34_vm3, %v33_v8  }
  0x8a   :  { %v39_v10 = vld [vmem:[#allocation0] sm:$0xf] }
  0x8b   :  { %41 = vst [vmem:[%s74_s1] sm:$0xf] %v39_v10 }

// kernel: tile.14
= control target key start
LH: loop header
LB: loop body
LE: loop exit
PB: predicated region body
PF: predicated region fallthrough
CT: control target
= control target key end

     0   :  { %vm21_vm0 = vcmask 261120   ;;  %s56_s14 = smov 32   ;;  %s57_s15 = smov 64   ;;  %vm27_vm1 = vcmask 1048320   ;;  %vm33_vm2 = vcmask 785920   ;;  %vm39_vm3 = vcmask 523520   ;;  %s83_s0 = inlined_call_operand.vmem [shape: f32[4,4,32], index: 0, kind: input, shape index: {}]   ;;  %s84_s1 = inlined_call_operand.vmem [shape: f32[4,128], index: 1, kind: output, shape index: {}]  }
   0x1   :  { %v49_v0 = vld [vmem:[%s83_s0 + $0xc] sm:$0xf]  ;;  %v50_v1 = vld [vmem:[%s83_s0 + $0x8] sm:$0xf]  ;;  %v51_v2 = vld [vmem:[%s83_s0 + $0x4] sm:$0xf] }
   0x2   :  { %8 = vst [vmem:[#allocation1 + $0x18] sm:$0xf] %v49_v0  ;;  %13 = vst [vmem:[#allocation1 + $0x10] sm:$0xf] %v50_v1  ;;  %v18_v3 = vld [vmem:[%s83_s0] sm:$0xf] }
   0x3   :  { %17 = vst [vmem:[#allocation1 + $0x8] sm:$0xf] %v51_v2  ;;  %19 = vst [vmem:[#allocation1] sm:$0xf] %v18_v3  ;;  %s55_s0 = smov 96  }
   0xa   :  { %v24_v4 = vld [vmem:[#allocation1 + $0x3] ss:$8 sm:$0xf]   ;;  %v36_v5 = vld [vmem:[#allocation1 + $0x1] ss:$8 sm:$0xf]  }
   0xb   :  { %25 = vrot.lane.b32.xlu0 %v24_v4, %s55_s0  ;;  %v20_v6 = vld [vmem:[#allocation1] ss:$8 sm:$0xf]   ;;  %v30_v7 = vld [vmem:[#allocation1 + $0x2] ss:$8 sm:$0xf]   ;;  %37 = vrot.lane.b32.xlu1 %v36_v5, %s56_s14 }
   0xc   :  { %22 = vst.msk [vmem:[#allocation0] sm:$0xf] %vm21_vm0, %v20_v6  }
   0xf   :  { %31 = vrot.lane.b32.xlu0 %v30_v7, %s57_s15 }
  0x7d   :  { %v26_v8 = vpop.permute.xlu0 %25   ;;  %v38_v9 = vpop.permute.xlu1 %37  }
  0x7e   :  { %28 = vst.msk [vmem:[#allocation0] sm:$0xf] %vm27_vm1, %v26_v8  }
  0x81   :  { %v32_v10 = vpop.permute.xlu0 %31  }
  0x82   :  { %34 = vst.msk [vmem:[#allocation0] sm:$0xf] %vm33_vm2, %v32_v10  }
  0x83   :  { %40 = vst.msk [vmem:[#allocation0] sm:$0xf] %vm39_vm3, %v38_v9  }
  0x8a   :  { %v44_v11 = vld [vmem:[#allocation0] sm:$0xf] }
  0x8b   :  { %46 = vst [vmem:[%s84_s1] sm:$0xf] %v44_v11 }

// kernel: dfsmn_forward.1
= control target key start
LH: loop header
LB: loop body
LE: loop exit
PB: predicated region body
PF: predicated region fallthrough
CT: control target
= control target key end

     0   :  { %v27_v0 = vlaneseq  ;;  %s1069_s0 = inlined_call_operand.vmem [shape: f32[16,2,128], index: 0, kind: input, shape index: {}, may-alias: {0,3}]   ;;  %s1070_s1 = inlined_call_operand.vmem [shape: f32[4,128], index: 1, kind: input, shape index: {}]   ;;  %s1071_s2 = inlined_call_operand.vmem [shape: f32[3,128], index: 2, kind: input, shape index: {}]   ;;  %s1072_s3 = inlined_call_operand.vmem [shape: f32[16,2,128], index: 3, kind: output, shape index: {}, may-alias: {0,3}]  }
   0x1   :  { %v522_v1 = vld [vmem:[%s1070_s1] sm:$0xf]  ;;  %v382_v7 = vld [vmem:[%s1069_s0 + $0x4] sm:$0x3]  ;;  %v392_v10 = vld [vmem:[%s1069_s0 + $0x8] sm:$0x3] }
   0x2   :  { %v16_v2 = vadd.f32 1.0, %v522_v1  ;;  %v525_v3 = vshrl.u32 %v27_v0, 7  ;;  %v15_v4 = vld [vmem:[%s1071_s2] sm:$0x7]  ;;  %v402_v11 = vld [vmem:[%s1069_s0 + $0xc] sm:$0x3] }
   0x3   :  { %v17_v5 = vld [vmem:[%s1069_s0] sm:$0x3]  ;;  %v18_v12 = vld [vmem:[%s1069_s0 + $0x2] sm:$0x3]  ;;  %v383_v17 = vld [vmem:[%s1069_s0 + $0x6] sm:$0x3] }
   0x4   :  { %v29_v6 = vsub.s32 0, %v525_v3  ;;  %v89_v8 = vsub.s32 1, %v525_v3  ;;  %v124_v9 = vsub.s32 2, %v525_v3  ;;  %v393_v18 = vld [vmem:[%s1069_s0 + $0xa] sm:$0x3] }
   0x5   :  { %v403_v19 = vld [vmem:[%s1069_s0 + $0xe] sm:$0x3]  ;;  %v19_v21 = vld [vmem:[%s1069_s0 + $0x4] sm:$0x3]  ;;  %v384_v22 = vld [vmem:[%s1069_s0 + $0x8] sm:$0x3] }
   0x6   :  { %v548_v13 = vrot.slane %v16_v2, %v29_v6  ;;  %v550_v14 = vrot.slane %v15_v4, %v29_v6  ;;  %v552_v15 = vrot.slane %v15_v4, %v89_v8  ;;  %v556_v16 = vrot.slane %v15_v4, %v124_v9  ;;  %v394_v23 = vld [vmem:[%s1069_s0 + $0xc] sm:$0x3]  ;;  %v404_v28 = vld [vmem:[%s1069_s0 + $0x10] sm:$0x3]  ;;  %v20_v29 = vld [vmem:[%s1069_s0 + $0x6] sm:$0x3] }
   0x7   :  { %v568_v20 = vrot.slane %v522_v1, %v89_v8  ;;  %v385_v30 = vld [vmem:[%s1069_s0 + $0xa] sm:$0x3]  ;;  %v395_v35 = vld [vmem:[%s1069_s0 + $0xe] sm:$0x3]  ;;  %v405_v36 = vld [vmem:[%s1069_s0 + $0x12] sm:$0x3] }
   0x8   :  { %v31_v24 = vmul.f32 %v548_v13, %v17_v5  ;;  %v56_v25 = vmul.f32 %v382_v7, %v550_v14  ;;  %v91_v26 = vmul.f32 %v392_v10, %v552_v15  ;;  %v126_v27 = vmul.f32 %v402_v11, %v556_v16  ;;  %v21_v41 = vld [vmem:[%s1069_s0 + $0x8] sm:$0x3]  ;;  %v386_v42 = vld [vmem:[%s1069_s0 + $0xc] sm:$0x3]  ;;  %v396_v47 = vld [vmem:[%s1069_s0 + $0x10] sm:$0x3] }
   0x9   :  { %v32_v31 = vmul.f32 %v548_v13, %v18_v12  ;;  %v57_v32 = vmul.f32 %v383_v17, %v550_v14  ;;  %v92_v33 = vmul.f32 %v393_v18, %v552_v15  ;;  %v127_v34 = vmul.f32 %v403_v19, %v556_v16  ;;  %v406_v48 = vld [vmem:[%s1069_s0 + $0x14] sm:$0x3]  ;;  %v22_v53 = vld [vmem:[%s1069_s0 + $0xa] sm:$0x3]  ;;  %v387_v58 = vld [vmem:[%s1069_s0 + $0xe] sm:$0x3] }
   0xa   :  { %v66_v37 = vadd.f32 %v56_v25, %v31_v24  ;;  %v33_v38 = vmul.f32 %v548_v13, %v19_v21  ;;  %v58_v39 = vmul.f32 %v384_v22, %v550_v14  ;;  %v93_v40 = vmul.f32 %v394_v23, %v552_v15  ;;  %v397_v59 = vld [vmem:[%s1069_s0 + $0x12] sm:$0x3]  ;;  %v407_v60 = vld [vmem:[%s1069_s0 + $0x16] sm:$0x3]  ;;  %v23_v2 = vld [vmem:[%s1069_s0 + $0xc] sm:$0x3] }
   0xb   :  { %v67_v43 = vadd.f32 %v57_v32, %v32_v31  ;;  %v128_v44 = vmul.f32 %v404_v28, %v556_v16  ;;  %v34_v45 = vmul.f32 %v548_v13, %v20_v29  ;;  %v59_v46 = vmul.f32 %v385_v30, %v550_v14  ;;  %v388_v4 = vld [vmem:[%s1069_s0 + $0x10] sm:$0x3]  ;;  %v398_v10 = vld [vmem:[%s1069_s0 + $0x14] sm:$0x3]  ;;  %v408_v11 = vld [vmem:[%s1069_s0 + $0x18] sm:$0x3] }
   0xc   :  { %v101_v49 = vadd.f32 %v91_v26, %v66_v37  ;;  %v68_v50 = vadd.f32 %v58_v39, %v33_v38  ;;  %v94_v51 = vmul.f32 %v395_v35, %v552_v15  ;;  %v129_v52 = vmul.f32 %v405_v36, %v556_v16  ;;  %v24_v12 = vld [vmem:[%s1069_s0 + $0xe] sm:$0x3] }
   0xd   :  { %v102_v54 = vadd.f32 %v92_v33, %v67_v43  ;;  %v69_v55 = vadd.f32 %v59_v46, %v34_v45  ;;  %v35_v56 = vmul.f32 %v548_v13, %v21_v41  ;;  %v60_v57 = vmul.f32 %v386_v42, %v550_v14 }
   0xe   :  { %v136_v61 = vadd.f32 %v126_v27, %v101_v49  ;;  %v103_v62 = vadd.f32 %v93_v40, %v68_v50  ;;  %v95_v63 = vmul.f32 %v396_v47, %v552_v15  ;;  %v130_v0 = vmul.f32 %v406_v48, %v556_v16 }
   0xf   :  { %v137_v5 = vadd.f32 %v127_v34, %v102_v54  ;;  %v104_v6 = vadd.f32 %v94_v51, %v69_v55  ;;  %v70_v7 = vadd.f32 %v60_v57, %v35_v56  ;;  %v36_v8 = vmul.f32 %v548_v13, %v22_v53 }
  0x10   :  { %146 = vst [vmem:[%s1072_s3] sm:$0x3] %v136_v61  ;;  %v138_v17 = vadd.f32 %v128_v44, %v103_v62  ;;  %v61_v18 = vmul.f32 %v387_v58, %v550_v14  ;;  %v96_v19 = vmul.f32 %v397_v59, %v552_v15  ;;  %v131_v21 = vmul.f32 %v407_v60, %v556_v16 }
  0x11   :  { %v139_v24 = vadd.f32 %v129_v52, %v104_v6  ;;  %v105_v25 = vadd.f32 %v95_v63, %v70_v7  ;;  %v37_v26 = vmul.f32 %v548_v13, %v23_v2  ;;  %v62_v27 = vmul.f32 %v388_v4, %v550_v14 }
  0x12   :  { %v71_v31 = vadd.f32 %v61_v18, %v36_v8  ;;  %v97_v32 = vmul.f32 %v398_v10, %v552_v15  ;;  %v132_v33 = vmul.f32 %v408_v11, %v556_v16  ;;  %v38_v34 = vmul.f32 %v548_v13, %v24_v12 }
  0x13   :  { %v140_v37 = vadd.f32 %v130_v0, %v105_v25  ;;  %v72_v38 = vadd.f32 %v62_v27, %v37_v26 }
  0x14   :  { %v106_v43 = vadd.f32 %v96_v19, %v71_v31 }
  0x15   :  { %v107_v48 = vadd.f32 %v97_v32, %v72_v38 }
  0x16   :  { %v141_v53 = vadd.f32 %v131_v21, %v106_v43 }
  0x17   :  { %v389_v22 = vld [vmem:[%s1069_s0 + $0x12] sm:$0x3]  ;;  %v399_v23 = vld [vmem:[%s1069_s0 + $0x16] sm:$0x3]  ;;  %v200_v59 = vld [vmem:[%s1072_s3] sm:$0x3]  ;;  %v142_v60 = vadd.f32 %v132_v33, %v107_v48 }
  0x18   :  { %147 = vst [vmem:[%s1072_s3 + $0x2] sm:$0x3] %v137_v5  ;;  %v63_v39 = vmul.f32 %v389_v22, %v550_v14  ;;  %v98_v40 = vmul.f32 %v399_v23, %v552_v15  ;;  %v205_v0 = vmul.f32 %v568_v20, %v200_v59  ;;  %v764_v22 = vrot.slane %v522_v1, %v124_v9  ;;  %v213_v25 = vld [vmem:[%s1072_s3] sm:$0x3] }
  0x1a   :  { %v73_v49 = vadd.f32 %v63_v39, %v38_v34 }
  0x1c   :  { %v108_v61 = vadd.f32 %v98_v40, %v73_v49 }
  0x1f   :  { %v409_v28 = vld [vmem:[%s1069_s0 + $0x1a] sm:$0x3]  ;;  %v25_v29 = vld [vmem:[%s1069_s0 + $0x10] sm:$0x3]  ;;  %v390_v30 = vld [vmem:[%s1069_s0 + $0x14] sm:$0x3] }
  0x20   :  { %148 = vst [vmem:[%s1072_s3 + $0x4] sm:$0x3] %v138_v17  ;;  %v133_v44 = vmul.f32 %v409_v28, %v556_v16  ;;  %v39_v45 = vmul.f32 %v548_v13, %v25_v29  ;;  %v64_v46 = vmul.f32 %v390_v30, %v550_v14  ;;  %v430_v63 = vld [vmem:[%s1072_s3 + $0x2] sm:$0x3]  ;;  %v218_v29 = vmul.f32 %v764_v22, %v213_v25 }
  0x21   :  { %v206_v11 = vadd.f32 %v430_v63, %v205_v0 }
  0x22   :  { %v74_v54 = vadd.f32 %v64_v46, %v39_v45  ;;  %v143_v6 = vadd.f32 %v133_v44, %v108_v61 }
  0x27   :  { %v400_v35 = vld [vmem:[%s1069_s0 + $0x18] sm:$0x3]  ;;  %v410_v36 = vld [vmem:[%s1069_s0 + $0x1c] sm:$0x3]  ;;  %v432_v23 = vld [vmem:[%s1072_s3 + $0x4] sm:$0x3] }
  0x28   :  { %149 = vst [vmem:[%s1072_s3 + $0x6] sm:$0x3] %v139_v24  ;;  %v99_v50 = vmul.f32 %v400_v35, %v552_v15  ;;  %v134_v51 = vmul.f32 %v410_v36, %v556_v16 }
  0x2a   :  { %v109_v2 = vadd.f32 %v99_v50, %v74_v54 }
  0x2c   :  { %v144_v12 = vadd.f32 %v134_v51, %v109_v2 }
  0x2f   :  { %v26_v41 = vld [vmem:[%s1069_s0 + $0x12] sm:$0x3]  ;;  %v391_v42 = vld [vmem:[%s1069_s0 + $0x16] sm:$0x3]  ;;  %v401_v47 = vld [vmem:[%s1069_s0 + $0x1a] sm:$0x3] }
  0x30   :  { %150 = vst [vmem:[%s1072_s3 + $0x8] sm:$0x3] %v140_v37  ;;  %v40_v55 = vmul.f32 %v548_v13, %v26_v41  ;;  %v65_v56 = vmul.f32 %v391_v42, %v550_v14  ;;  %v100_v62 = vmul.f32 %v401_v47, %v552_v15  ;;  %v232_v37 = vsub.s32 3, %v525_v3  ;;  %v435_v38 = vld [vmem:[%s1072_s3 + $0x6] sm:$0x3] }
  0x31   :  { %v229_v3 = vld [vmem:[%s1072_s3] sm:$0x3] }
  0x32   :  { %v75_v7 = vadd.f32 %v65_v56, %v40_v55  ;;  %v806_v40 = vrot.slane %v522_v1, %v232_v37 }
  0x34   :  { %v234_v45 = vmul.f32 %v806_v40, %v229_v3 }
  0x37   :  { %v411_v52 = vld [vmem:[%s1069_s0 + $0x1e] sm:$0x3]  ;;  %v412_v57 = vld [vmem:[%s1069_s0 + $0x14] sm:$0x3]  ;;  %v414_v58 = vld [vmem:[%s1069_s0 + $0x18] sm:$0x3] }
  0x38   :  { %151 = vst [vmem:[%s1072_s3 + $0xa] sm:$0x3] %v141_v53  ;;  %v135_v4 = vmul.f32 %v411_v52, %v556_v16  ;;  %v159_v8 = vmul.f32 %v412_v57, %v548_v13  ;;  %v164_v10 = vmul.f32 %v414_v58, %v550_v14  ;;  %v110_v16 = vadd.f32 %v100_v62, %v75_v7  ;;  %v439_v51 = vld [vmem:[%s1072_s3 + $0x8] sm:$0x3] }
  0x3a   :  { %v166_v18 = vadd.f32 %v164_v10, %v159_v8  ;;  %v145_v19 = vadd.f32 %v135_v4, %v110_v16 }
  0x3f   :  { %v416_v5 = vld [vmem:[%s1069_s0 + $0x1c] sm:$0x3]  ;;  %v444_v4 = vld [vmem:[%s1072_s3 + $0xa] sm:$0x3] }
  0x40   :  { %152 = vst [vmem:[%s1072_s3 + $0xc] sm:$0x3] %v142_v60  ;;  %v171_v17 = vmul.f32 %v416_v5, %v552_v15  ;;  %153 = vst [vmem:[%s1072_s3 + $0xe] sm:$0x3] %v143_v6 }
  0x41   :  { %431 = vst [vmem:[%s1072_s3 + $0x2] sm:$0x3] %v206_v11  ;;  %154 = vst [vmem:[%s1072_s3 + $0x10] sm:$0x3] %v144_v12 }
  0x42   :  { %v173_v21 = vadd.f32 %v171_v17, %v166_v18  ;;  %155 = vst [vmem:[%s1072_s3 + $0x12] sm:$0x3] %v145_v19 }
  0x44   :  { %418 = vst [vmem:[%s1072_s3 + $0x14] sm:$0x3] %v173_v21 }
  0x47   :  { %v449_v19 = vld [vmem:[%s1072_s3 + $0xc] sm:$0x3] }
  0x48   :  { %v433_v24 = vld [vmem:[%s1072_s3 + $0x2] sm:$0x3] }
  0x49   :  { %v211_v26 = vmul.f32 %v433_v24, %v568_v20  ;;  %v442_v55 = vld [vmem:[%s1072_s3 + $0x2] sm:$0x3] }
  0x4a   :  { %v246_v59 = vmul.f32 %v442_v55, %v806_v40 }
  0x4b   :  { %v413_v27 = vld [vmem:[%s1069_s0 + $0x16] sm:$0x3]  ;;  %v415_v9 = vld [vmem:[%s1069_s0 + $0x1a] sm:$0x3]  ;;  %v212_v28 = vadd.f32 %v432_v23, %v211_v26  ;;  %v417_v32 = vld [vmem:[%s1069_s0 + $0x1e] sm:$0x3] }
  0x4c   :  { %v160_v30 = vmul.f32 %v413_v27, %v548_v13  ;;  %v165_v31 = vmul.f32 %v415_v9, %v550_v14  ;;  %v172_v35 = vmul.f32 %v417_v32, %v552_v15  ;;  %v437_v15 = vld [vmem:[%s1072_s3 + $0x2] sm:$0x3]  ;;  %v454_v32 = vld [vmem:[%s1072_s3 + $0xe] sm:$0x3] }
  0x4d   :  { %v219_v33 = vadd.f32 %v218_v29, %v212_v28  ;;  %v227_v43 = vmul.f32 %v437_v15, %v764_v22 }
  0x4e   :  { %v167_v34 = vadd.f32 %v165_v31, %v160_v30 }
  0x4f   :  { %434 = vst [vmem:[%s1072_s3 + $0x4] sm:$0x3] %v219_v33 }
  0x50   :  { %v174_v36 = vadd.f32 %v172_v35, %v167_v34 }
  0x52   :  { %419 = vst [vmem:[%s1072_s3 + $0x16] sm:$0x3] %v174_v36 }
  0x56   :  { %v436_v39 = vld [vmem:[%s1072_s3 + $0x4] sm:$0x3] }
  0x57   :  { %v224_v41 = vmul.f32 %v436_v39, %v568_v20  ;;  %v441_v53 = vld [vmem:[%s1072_s3 + $0x4] sm:$0x3] }
  0x58   :  { %v243_v57 = vmul.f32 %v441_v53, %v764_v22  ;;  %v447_v7 = vld [vmem:[%s1072_s3 + $0x4] sm:$0x3] }
  0x59   :  { %v225_v42 = vadd.f32 %v435_v38, %v224_v41  ;;  %v420_v46 = vld [vmem:[%s1069_s0 + $0x18] sm:$0x3]  ;;  %v422_v1 = vld [vmem:[%s1069_s0 + $0x1c] sm:$0x3]  ;;  %v258_v12 = vmul.f32 %v447_v7, %v806_v40  ;;  %v459_v41 = vld [vmem:[%s1072_s3 + $0x10] sm:$0x3] }
  0x5a   :  { %v180_v48 = vmul.f32 %v420_v46, %v548_v13  ;;  %v184_v49 = vmul.f32 %v422_v1, %v550_v14 }
  0x5b   :  { %v228_v44 = vadd.f32 %v227_v43, %v225_v42 }
  0x5c   :  { %v186_v50 = vadd.f32 %v184_v49, %v180_v48  ;;  %v464_v49 = vld [vmem:[%s1072_s3 + $0x12] sm:$0x3] }
  0x5d   :  { %v235_v47 = vadd.f32 %v234_v45, %v228_v44 }
  0x5e   :  { %424 = vst [vmem:[%s1072_s3 + $0x18] sm:$0x3] %v186_v50 }
  0x5f   :  { %438 = vst [vmem:[%s1072_s3 + $0x6] sm:$0x3] %v235_v47 }
  0x66   :  { %v440_v52 = vld [vmem:[%s1072_s3 + $0x6] sm:$0x3]  ;;  %v421_v60 = vld [vmem:[%s1069_s0 + $0x1a] sm:$0x3]  ;;  %v423_v61 = vld [vmem:[%s1069_s0 + $0x1e] sm:$0x3] }
  0x67   :  { %v240_v54 = vmul.f32 %v440_v52, %v568_v20  ;;  %v181_v63 = vmul.f32 %v421_v60, %v548_v13  ;;  %v185_v0 = vmul.f32 %v423_v61, %v550_v14  ;;  %v446_v14 = vld [vmem:[%s1072_s3 + $0x6] sm:$0x3] }
  0x68   :  { %v255_v10 = vmul.f32 %v446_v14, %v764_v22  ;;  %v452_v25 = vld [vmem:[%s1072_s3 + $0x6] sm:$0x3] }
  0x69   :  { %v241_v56 = vadd.f32 %v439_v51, %v240_v54  ;;  %v187_v2 = vadd.f32 %v185_v0, %v181_v63  ;;  %v270_v28 = vmul.f32 %v452_v25, %v806_v40 }
  0x6b   :  { %v244_v58 = vadd.f32 %v243_v57, %v241_v56  ;;  %425 = vst [vmem:[%s1072_s3 + $0x1a] sm:$0x3] %v187_v2 }
  0x6d   :  { %v247_v62 = vadd.f32 %v246_v59, %v244_v58  ;;  %v469_v59 = vld [vmem:[%s1072_s3 + $0x14] sm:$0x3] }
  0x6f   :  { %443 = vst [vmem:[%s1072_s3 + $0x8] sm:$0x3] %v247_v62 }
  0x76   :  { %v445_v5 = vld [vmem:[%s1072_s3 + $0x8] sm:$0x3]  ;;  %v426_v16 = vld [vmem:[%s1069_s0 + $0x1c] sm:$0x3] }
  0x77   :  { %v252_v6 = vmul.f32 %v445_v5, %v568_v20  ;;  %v193_v18 = vmul.f32 %v426_v16, %v548_v13  ;;  %v451_v23 = vld [vmem:[%s1072_s3 + $0x8] sm:$0x3] }
  0x78   :  { %v267_v27 = vmul.f32 %v451_v23, %v764_v22 }
  0x79   :  { %v253_v8 = vadd.f32 %v444_v4, %v252_v6  ;;  %428 = vst [vmem:[%s1072_s3 + $0x1c] sm:$0x3] %v193_v18  ;;  %v474_v6 = vld [vmem:[%s1072_s3 + $0x16] sm:$0x3] }
  0x7b   :  { %v256_v11 = vadd.f32 %v255_v10, %v253_v8 }
  0x7d   :  { %v259_v17 = vadd.f32 %v258_v12, %v256_v11 }
  0x7f   :  { %448 = vst [vmem:[%s1072_s3 + $0xa] sm:$0x3] %v259_v17 }
  0x86   :  { %v450_v21 = vld [vmem:[%s1072_s3 + $0xa] sm:$0x3]  ;;  %v427_v30 = vld [vmem:[%s1069_s0 + $0x1e] sm:$0x3] }
  0x87   :  { %v264_v24 = vmul.f32 %v450_v21, %v568_v20  ;;  %v194_v31 = vmul.f32 %v427_v30, %v548_v13  ;;  %v456_v34 = vld [vmem:[%s1072_s3 + $0xa] sm:$0x3]  ;;  %v457_v13 = vld [vmem:[%s1072_s3 + $0x8] sm:$0x3]  ;;  %v479_v21 = vld [vmem:[%s1072_s3 + $0x18] sm:$0x3] }
  0x88   :  { %v279_v37 = vmul.f32 %v456_v34, %v764_v22  ;;  %v282_v39 = vmul.f32 %v457_v13, %v806_v40  ;;  %v462_v44 = vld [vmem:[%s1072_s3 + $0xa] sm:$0x3] }
  0x89   :  { %v265_v26 = vadd.f32 %v449_v19, %v264_v24  ;;  %429 = vst [vmem:[%s1072_s3 + $0x1e] sm:$0x3] %v194_v31  ;;  %v294_v47 = vmul.f32 %v462_v44, %v806_v40  ;;  %v484_v31 = vld [vmem:[%s1072_s3 + $0x1a] sm:$0x3] }
  0x8b   :  { %v268_v9 = vadd.f32 %v267_v27, %v265_v26 }
  0x8d   :  { %v271_v29 = vadd.f32 %v270_v28, %v268_v9 }
  0x8f   :  { %453 = vst [vmem:[%s1072_s3 + $0xc] sm:$0x3] %v271_v29 }
  0x96   :  { %v455_v33 = vld [vmem:[%s1072_s3 + $0xc] sm:$0x3] }
  0x97   :  { %v276_v35 = vmul.f32 %v455_v33, %v568_v20  ;;  %v461_v42 = vld [vmem:[%s1072_s3 + $0xc] sm:$0x3] }
  0x98   :  { %v291_v46 = vmul.f32 %v461_v42, %v764_v22  ;;  %v467_v53 = vld [vmem:[%s1072_s3 + $0xc] sm:$0x3] }
  0x99   :  { %v277_v36 = vadd.f32 %v454_v32, %v276_v35  ;;  %v306_v57 = vmul.f32 %v467_v53, %v806_v40 }
  0x9b   :  { %v280_v38 = vadd.f32 %v279_v37, %v277_v36 }
  0x9d   :  { %v283_v15 = vadd.f32 %v282_v39, %v280_v38 }
  0x9f   :  { %458 = vst [vmem:[%s1072_s3 + $0xe] sm:$0x3] %v283_v15  ;;  %v489_v15 = vld [vmem:[%s1072_s3 + $0x1c] sm:$0x3] }
  0xa6   :  { %v460_v3 = vld [vmem:[%s1072_s3 + $0xe] sm:$0x3] }
  0xa7   :  { %v288_v43 = vmul.f32 %v460_v3, %v568_v20  ;;  %v466_v51 = vld [vmem:[%s1072_s3 + $0xe] sm:$0x3] }
  0xa8   :  { %v303_v55 = vmul.f32 %v466_v51, %v764_v22  ;;  %v472_v63 = vld [vmem:[%s1072_s3 + $0xe] sm:$0x3] }
  0xa9   :  { %v289_v45 = vadd.f32 %v459_v41, %v288_v43  ;;  %v317_v5 = vmul.f32 %v472_v63, %v806_v40 }
  0xab   :  { %v292_v1 = vadd.f32 %v291_v46, %v289_v45 }
  0xad   :  { %v295_v48 = vadd.f32 %v294_v47, %v292_v1 }
  0xaf   :  { %463 = vst [vmem:[%s1072_s3 + $0x10] sm:$0x3] %v295_v48  ;;  %v494_v48 = vld [vmem:[%s1072_s3 + $0x1e] sm:$0x3] }
  0xb6   :  { %v465_v50 = vld [vmem:[%s1072_s3 + $0x10] sm:$0x3] }
  0xb7   :  { %v300_v52 = vmul.f32 %v465_v50, %v568_v20  ;;  %v471_v61 = vld [vmem:[%s1072_s3 + $0x10] sm:$0x3] }
  0xb8   :  { %v314_v2 = vmul.f32 %v471_v61, %v764_v22  ;;  %v477_v11 = vld [vmem:[%s1072_s3 + $0x10] sm:$0x3] }
  0xb9   :  { %v301_v54 = vadd.f32 %v464_v49, %v300_v52  ;;  %v329_v18 = vmul.f32 %v477_v11, %v806_v40 }
  0xbb   :  { %v304_v56 = vadd.f32 %v303_v55, %v301_v54 }
  0xbd   :  { %v307_v58 = vadd.f32 %v306_v57, %v304_v56 }
  0xbf   :  { %468 = vst [vmem:[%s1072_s3 + $0x12] sm:$0x3] %v307_v58 }
  0xc6   :  { %v470_v60 = vld [vmem:[%s1072_s3 + $0x12] sm:$0x3] }
  0xc7   :  { %v311_v62 = vmul.f32 %v470_v60, %v568_v20  ;;  %v476_v8 = vld [vmem:[%s1072_s3 + $0x12] sm:$0x3] }
  0xc8   :  { %v326_v17 = vmul.f32 %v476_v8, %v764_v22  ;;  %v482_v26 = vld [vmem:[%s1072_s3 + $0x12] sm:$0x3] }
  0xc9   :  { %v312_v0 = vadd.f32 %v469_v59, %v311_v62  ;;  %v340_v29 = vmul.f32 %v482_v26, %v806_v40 }
  0xcb   :  { %v315_v4 = vadd.f32 %v314_v2, %v312_v0 }
  0xcd   :  { %v318_v14 = vadd.f32 %v317_v5, %v315_v4 }
  0xcf   :  { %473 = vst [vmem:[%s1072_s3 + $0x14] sm:$0x3] %v318_v14 }
  0xd6   :  { %v475_v7 = vld [vmem:[%s1072_s3 + $0x14] sm:$0x3] }
  0xd7   :  { %v323_v10 = vmul.f32 %v475_v7, %v568_v20  ;;  %v481_v24 = vld [vmem:[%s1072_s3 + $0x14] sm:$0x3] }
  0xd8   :  { %v337_v9 = vmul.f32 %v481_v24, %v764_v22  ;;  %v487_v35 = vld [vmem:[%s1072_s3 + $0x14] sm:$0x3] }
  0xd9   :  { %v324_v12 = vadd.f32 %v474_v6, %v323_v10  ;;  %v352_v38 = vmul.f32 %v487_v35, %v806_v40 }
  0xdb   :  { %v327_v16 = vadd.f32 %v326_v17, %v324_v12 }
  0xdd   :  { %v330_v19 = vadd.f32 %v329_v18, %v327_v16 }
  0xdf   :  { %478 = vst [vmem:[%s1072_s3 + $0x16] sm:$0x3] %v330_v19 }
  0xe6   :  { %v480_v23 = vld [vmem:[%s1072_s3 + $0x16] sm:$0x3] }
  0xe7   :  { %v334_v25 = vmul.f32 %v480_v23, %v568_v20  ;;  %v486_v33 = vld [vmem:[%s1072_s3 + $0x16] sm:$0x3] }
  0xe8   :  { %v349_v36 = vmul.f32 %v486_v33, %v764_v22  ;;  %v492_v43 = vld [vmem:[%s1072_s3 + $0x16] sm:$0x3] }
  0xe9   :  { %v335_v27 = vadd.f32 %v479_v21, %v334_v25  ;;  %v363_v1 = vmul.f32 %v492_v43, %v806_v40 }
  0xeb   :  { %v338_v28 = vadd.f32 %v337_v9, %v335_v27 }
  0xed   :  { %v341_v30 = vadd.f32 %v340_v29, %v338_v28 }
  0xef   :  { %483 = vst [vmem:[%s1072_s3 + $0x18] sm:$0x3] %v341_v30 }
  0xf6   :  { %v485_v32 = vld [vmem:[%s1072_s3 + $0x18] sm:$0x3] }
  0xf7   :  { %v346_v34 = vmul.f32 %v485_v32, %v568_v20  ;;  %v491_v3 = vld [vmem:[%s1072_s3 + $0x18] sm:$0x3] }
  0xf8   :  { %v360_v45 = vmul.f32 %v491_v3, %v764_v22  ;;  %v497_v52 = vld [vmem:[%s1072_s3 + $0x18] sm:$0x3] }
  0xf9   :  { %v347_v13 = vadd.f32 %v484_v31, %v346_v34  ;;  %v375_v56 = vmul.f32 %v497_v52, %v806_v40 }
  0xfb   :  { %v350_v37 = vadd.f32 %v349_v36, %v347_v13 }
  0xfd   :  { %v353_v39 = vadd.f32 %v352_v38, %v350_v37 }
  0xff   :  { %488 = vst [vmem:[%s1072_s3 + $0x1a] sm:$0x3] %v353_v39 }
 0x106   :  { %v490_v41 = vld [vmem:[%s1072_s3 + $0x1a] sm:$0x3] }
 0x107   :  { %v357_v42 = vmul.f32 %v490_v41, %v568_v20  ;;  %v496_v50 = vld [vmem:[%s1072_s3 + $0x1a] sm:$0x3] }
 0x108   :  { %v372_v54 = vmul.f32 %v496_v50, %v764_v22 }
 0x109   :  { %v358_v44 = vadd.f32 %v489_v15, %v357_v42 }
 0x10b   :  { %v361_v46 = vadd.f32 %v360_v45, %v358_v44 }
 0x10d   :  { %v364_v47 = vadd.f32 %v363_v1, %v361_v46 }
 0x10f   :  { %493 = vst [vmem:[%s1072_s3 + $0x1c] sm:$0x3] %v364_v47 }
 0x116   :  { %v495_v49 = vld [vmem:[%s1072_s3 + $0x1c] sm:$0x3] }
 0x117   :  { %v369_v51 = vmul.f32 %v495_v49, %v568_v20 }
 0x119   :  { %v370_v53 = vadd.f32 %v494_v48, %v369_v51 }
 0x11b   :  { %v373_v55 = vadd.f32 %v372_v54, %v370_v53 }
 0x11d   :  { %v376_v57 = vadd.f32 %v375_v56, %v373_v55 }
 0x11f   :  { %498 = vst [vmem:[%s1072_s3 + $0x1e] sm:$0x3] %v376_v57 }

</bundles_post_ra>
